<compile_context>
chip_gen: v7x
topology: tpu7x:2x2x1
jax: 0.10.0
libtpu: 0.0.40
codegen_flags: <defaults>
</compile_context>

<pallas_src>
import jax
import jax.numpy as jnp
import numpy as np
from jax import lax
from jax.experimental import pallas as pl
from jax.experimental.pallas import tpu as pltpu

# ------------------------- small, module-consistent sizes -------------------
EMBED_DIM = 32          # embed_dim    (512 in the original module)
HIDDEN_DIM = 32         # hidden_dim   (512 in the original module)
VOCAB_SIZE = 256        # vocab_size   (CLIP tokenizer vocab in the original)
BATCH = 2
SEQ = 8
IN_DIM = EMBED_DIM + HIDDEN_DIM   # LSTM input size


# --------------------- kernel 1: serial LSTM recurrence ----------------------
def _lstm_recurrence_kernel(gx_ref,     # (B, T, 4H)  precomputed x_t @ W_ih^T + b
                            whh_ref,    # (H, 4H)     W_hh^T
                            hall_ref):  # (B, T, H)   all hidden states
    B, T, _ = gx_ref.shape
    H = hall_ref.shape[-1]

    gx = gx_ref[...]           # (B, T, 4H)  resident in vregs/VMEM
    whh = whh_ref[...]         # (H, 4H)

    h = jnp.zeros((B, H), jnp.float32)
    c = jnp.zeros((B, H), jnp.float32)

    # T is small and static here: a fully unrolled Python loop keeps h/c in
    # vregs and gives the scheduler cross-timestep overlap.
    # TODO(synk): for long T, switch to pl.loop with h/c in VMEM scratch.
    for t in range(T):
        gates = gx[:, t, :] + jnp.dot(h, whh,
                                      preferred_element_type=jnp.float32)
        # PyTorch gate order: i, f, g, o
        i_g = jax.nn.sigmoid(gates[:, 0 * H:1 * H])
        f_g = jax.nn.sigmoid(gates[:, 1 * H:2 * H])
        g_g = jnp.tanh(gates[:, 2 * H:3 * H])
        o_g = jax.nn.sigmoid(gates[:, 3 * H:4 * H])
        c = f_g * c + i_g * g_g
        h = o_g * jnp.tanh(c)
        hall_ref[:, pl.ds(t, 1), :] = h[:, None, :]


# --------------------- kernel 2: batched, V-tiled final FC -------------------
def _fc_kernel(h_ref,    # (M, H)    all hidden states, M = B*T
               w_ref,    # (H, TV)   W_fc^T tile over V
               b_ref,    # (1, TV)   bias tile
               o_ref):   # (M, TV)   logits tile
    o_ref[...] = (jnp.dot(h_ref[...], w_ref[...],
                          preferred_element_type=jnp.float32)
                  + b_ref[...]).astype(o_ref.dtype)


# --------------------------------- wrapper -----------------------------------
def decoder_pallas(features, captions, params):
    """features: (B, H) f32; captions: (B, T) int32 -> logits (B, T, V) f32."""
    B, T = captions.shape
    E = params["embedding"].shape[1]
    H = params["w_hh"].shape[1]
    V = params["w_fc"].shape[0]
    G = 4 * H

    # ---- glue: embedding gather + hoisted input projection (plain JAX) ----
    emb = jnp.take(params["embedding"], captions, axis=0)            # (B, T, E)
    w_ih_e = params["w_ih"][:, :E]                                   # (4H, E)
    w_ih_f = params["w_ih"][:, E:]                                   # (4H, H)
    # embedding half: one batched matmul over all T*B tokens
    gx = jnp.einsum("bte,ge->btg", emb, w_ih_e)                      # (B, T, 4H)
    # feature half is time-invariant: compute once, broadcast over T; fold biases
    gxf = features @ w_ih_f.T + params["b_ih"] + params["b_hh"]      # (B, 4H)
    gx = gx + gxf[:, None, :]                                        # (B, T, 4H)

    whh_t = params["w_hh"].T                                         # (H, 4H)

    # ---- serial recurrence: single kernel invocation ----
    h_all = pl.pallas_call(
        _lstm_recurrence_kernel,
        out_shape=jax.ShapeDtypeStruct((B, T, H), jnp.float32),
        grid=(1,),
        in_specs=[
            pl.BlockSpec((B, T, G), lambda i: (0, 0, 0)),
            pl.BlockSpec((H, G), lambda i: (0, 0)),
        ],
        out_specs=pl.BlockSpec((B, T, H), lambda i: (0, 0, 0)),
        compiler_params=pltpu.CompilerParams(
            dimension_semantics=("arbitrary",)),
    )(gx, whh_t)

    # ---- FC: one batched (B*T, H) x (H, V) matmul, tiled over V ----
    h2d = h_all.reshape(B * T, H)                                    # (M, H)
    wfc_t = params["w_fc"].T                                         # (H, V)
    bfc = params["b_fc"].reshape(1, V)                               # (1, V)

    M = B * T
    TV = 128 if V % 128 == 0 else V   # lane-dense V tiles
    # TODO(synk): at production sizes (H=512, V~49k) cast weights to bf16 and
    # set pipeline_mode=pl.Buffered(1) on the row-resident h2d input; the
    # V-tiling below already keeps W_fc tiles small enough for v7x VMEM.
    logits2d = pl.pallas_call(
        _fc_kernel,
        out_shape=jax.ShapeDtypeStruct((M, V), jnp.float32),
        grid=(V // TV,),
        in_specs=[
            pl.BlockSpec((M, H), lambda j: (0, 0)),
            pl.BlockSpec((H, TV), lambda j: (0, j)),
            pl.BlockSpec((1, TV), lambda j: (0, j)),
        ],
        out_specs=pl.BlockSpec((M, TV), lambda j: (0, j)),
        compiler_params=pltpu.CompilerParams(
            dimension_semantics=("parallel",)),
    )(h2d, wfc_t, bfc)

    return logits2d.reshape(B, T, V)                                 # (B, T, V)


# --------------------------- pure-JAX reference ------------------------------
def decoder_ref(features, captions, params):
    B, T = captions.shape
    H = HIDDEN_DIM
    emb = jnp.take(params["embedding"], captions, axis=0)
    feat = jnp.broadcast_to(features[:, None, :], (B, T, H))
    x = jnp.concatenate([emb, feat], axis=-1)        # (B, T, D)
    x = jnp.transpose(x, (1, 0, 2))                  # (T, B, D)

    def step(carry, x_t):
        h, c = carry
        gates = (x_t @ params["w_ih"].T + params["b_ih"]
                 + h @ params["w_hh"].T + params["b_hh"])
        i_g = jax.nn.sigmoid(gates[:, 0 * H:1 * H])
        f_g = jax.nn.sigmoid(gates[:, 1 * H:2 * H])
        g_g = jnp.tanh(gates[:, 2 * H:3 * H])
        o_g = jax.nn.sigmoid(gates[:, 3 * H:4 * H])
        c = f_g * c + i_g * g_g
        h = o_g * jnp.tanh(c)
        return (h, c), h

    h0 = jnp.zeros((B, H), jnp.float32)
    _, hs = lax.scan(step, (h0, h0), x)              # (T, B, H)
    logits = hs @ params["w_fc"].T + params["b_fc"]  # (T, B, V)
    return jnp.transpose(logits, (1, 0, 2))


# ----------------------------------- main ------------------------------------
if __name__ == "__main__":
    key = jax.random.PRNGKey(0)
    ks = jax.random.split(key, 8)
    H, E, D, V = HIDDEN_DIM, EMBED_DIM, IN_DIM, VOCAB_SIZE
    s = 1.0 / np.sqrt(H)

    params = {
        "embedding": jax.random.normal(ks[0], (V, E), jnp.float32),
        "w_ih": jax.random.uniform(ks[1], (4 * H, D), jnp.float32, -s, s),
        "w_hh": jax.random.uniform(ks[2], (4 * H, H), jnp.float32, -s, s),
        "b_ih": jax.random.uniform(ks[3], (4 * H,), jnp.float32, -s, s),
        "b_hh": jax.random.uniform(ks[4], (4 * H,), jnp.float32, -s, s),
        "w_fc": jax.random.uniform(ks[5], (V, H), jnp.float32, -s, s),
        "b_fc": jax.random.uniform(ks[6], (V,), jnp.float32, -s, s),
    }

    features = jax.random.normal(ks[7], (BATCH, H), jnp.float32)
    captions = jax.random.randint(key, (BATCH, SEQ), 0, V, jnp.int32)

    out = jax.jit(decoder_pallas)(features, captions, params)
    out = jax.block_until_ready(out)

    ref = decoder_ref(features, captions, params)
    np.testing.assert_allclose(np.asarray(out), np.asarray(ref),
                               rtol=1e-3, atol=1e-3)
    assert out.shape == (BATCH, SEQ, VOCAB_SIZE)
    print("KERNEL_OK")
</pallas_src>

<mosaic_0001>
module attributes {stable_mosaic.version = 11 : i64} {
  func.func @_lstm_recurrence_kernel(%arg0: i32, %arg1: memref<2x8x128xf32, #tpu.memory_space<vmem>>, %arg2: memref<32x128xf32, #tpu.memory_space<vmem>>, %arg3: memref<2x8x32xf32, #tpu.memory_space<vmem>>) attributes {dimension_semantics = [#tpu.dimension_semantics<arbitrary>], iteration_bounds = array<i64: 1>, scalar_prefetch = 0 : i64, scratch_operands = 0 : i64, tpu.core_type = #tpu.core_type<tc>, window_params = [{pipeline_mode = #tpu.pipeline_mode<synchronous>, transform_indices = @transform_0, window_bounds = array<i64: 2, 8, 128>}, {pipeline_mode = #tpu.pipeline_mode<synchronous>, transform_indices = @transform_1, window_bounds = array<i64: 32, 128>}, {pipeline_mode = #tpu.pipeline_mode<synchronous>, transform_indices = @transform_2, window_bounds = array<i64: 2, 8, 32>}]} {
    %c0 = arith.constant 0 : index
    %c0_0 = arith.constant 0 : index
    %c0_1 = arith.constant 0 : index
    %0 = vector.load %arg1[%c0, %c0_0, %c0_1] : memref<2x8x128xf32, #tpu.memory_space<vmem>>, vector<2x8x128xf32>
    %c0_2 = arith.constant 0 : index
    %c0_3 = arith.constant 0 : index
    %1 = vector.load %arg2[%c0_2, %c0_3] : memref<32x128xf32, #tpu.memory_space<vmem>>, vector<32x128xf32>
    %cst = arith.constant 0.000000e+00 : f32
    %2 = vector.broadcast %cst : f32 to vector<2x32xf32>
    %cst_4 = arith.constant 0.000000e+00 : f32
    %3 = vector.broadcast %cst_4 : f32 to vector<2x32xf32>
    %4 = vector.extract_strided_slice %0 {offsets = [0, 0, 0], sizes = [2, 1, 128], strides = [1, 1, 1]} : vector<2x8x128xf32> to vector<2x1x128xf32>
    %5 = vector.shape_cast %4 : vector<2x1x128xf32> to vector<2x128xf32>
    %cst_5 = arith.constant dense<0.000000e+00> : vector<2x128xf32>
    %6 = tpu.matmul %2, %1, %cst_5 {dimension_numbers = #tpu.dot_dimension_numbers<[1], [0], [0], [1], [0, 0, 1, 1], [], []>} : vector<2x32xf32>, vector<32x128xf32>, vector<2x128xf32> -> vector<2x128xf32>
    %7 = arith.addf %5, %6 : vector<2x128xf32>
    %8 = vector.extract_strided_slice %7 {offsets = [0, 0], sizes = [2, 32], strides = [1, 1]} : vector<2x128xf32> to vector<2x32xf32>
    %9 = arith.negf %8 : vector<2x32xf32>
    %10 = math.exp %9 : vector<2x32xf32>
    %cst_6 = arith.constant 1.000000e+00 : f32
    %11 = vector.broadcast %cst_6 : f32 to vector<2x32xf32>
    %12 = arith.addf %11, %10 : vector<2x32xf32>
    %13 = arith.divf %11, %12 : vector<2x32xf32>
    %14 = vector.extract_strided_slice %7 {offsets = [0, 32], sizes = [2, 32], strides = [1, 1]} : vector<2x128xf32> to vector<2x32xf32>
    %15 = arith.negf %14 : vector<2x32xf32>
    %16 = math.exp %15 : vector<2x32xf32>
    %cst_7 = arith.constant 1.000000e+00 : f32
    %17 = vector.broadcast %cst_7 : f32 to vector<2x32xf32>
    %18 = arith.addf %17, %16 : vector<2x32xf32>
    %19 = arith.divf %17, %18 : vector<2x32xf32>
    %20 = vector.extract_strided_slice %7 {offsets = [0, 64], sizes = [2, 32], strides = [1, 1]} : vector<2x128xf32> to vector<2x32xf32>
    %21 = math.tanh %20 : vector<2x32xf32>
    %22 = vector.extract_strided_slice %7 {offsets = [0, 96], sizes = [2, 32], strides = [1, 1]} : vector<2x128xf32> to vector<2x32xf32>
    %23 = arith.negf %22 : vector<2x32xf32>
    %24 = math.exp %23 : vector<2x32xf32>
    %cst_8 = arith.constant 1.000000e+00 : f32
    %25 = vector.broadcast %cst_8 : f32 to vector<2x32xf32>
    %26 = arith.addf %25, %24 : vector<2x32xf32>
    %27 = arith.divf %25, %26 : vector<2x32xf32>
    %28 = arith.mulf %19, %3 : vector<2x32xf32>
    %29 = arith.mulf %13, %21 : vector<2x32xf32>
    %30 = arith.addf %28, %29 : vector<2x32xf32>
    %31 = math.tanh %30 : vector<2x32xf32>
    %32 = arith.mulf %27, %31 : vector<2x32xf32>
    %33 = vector.shape_cast %32 : vector<2x32xf32> to vector<2x1x32xf32>
    %c0_9 = arith.constant 0 : index
    %c0_10 = arith.constant 0 : index
    %c0_11 = arith.constant 0 : index
    %34 = vector.load %arg3[%c0_9, %c0_10, %c0_11] : memref<2x8x32xf32, #tpu.memory_space<vmem>>, vector<2x1x32xf32>
    tpu.vector_store %arg3[%c0_9, %c0_10, %c0_11], %33 {strides = array<i32>} : memref<2x8x32xf32, #tpu.memory_space<vmem>>, vector<2x1x32xf32>,
    %35 = vector.extract_strided_slice %0 {offsets = [0, 1, 0], sizes = [2, 1, 128], strides = [1, 1, 1]} : vector<2x8x128xf32> to vector<2x1x128xf32>
    %36 = vector.shape_cast %35 : vector<2x1x128xf32> to vector<2x128xf32>
    %cst_12 = arith.constant dense<0.000000e+00> : vector<2x128xf32>
    %37 = tpu.matmul %32, %1, %cst_12 {dimension_numbers = #tpu.dot_dimension_numbers<[1], [0], [0], [1], [0, 0, 1, 1], [], []>} : vector<2x32xf32>, vector<32x128xf32>, vector<2x128xf32> -> vector<2x128xf32>
    %38 = arith.addf %36, %37 : vector<2x128xf32>
    %39 = vector.extract_strided_slice %38 {offsets = [0, 0], sizes = [2, 32], strides = [1, 1]} : vector<2x128xf32> to vector<2x32xf32>
    %40 = arith.negf %39 : vector<2x32xf32>
    %41 = math.exp %40 : vector<2x32xf32>
    %cst_13 = arith.constant 1.000000e+00 : f32
    %42 = vector.broadcast %cst_13 : f32 to vector<2x32xf32>
    %43 = arith.addf %42, %41 : vector<2x32xf32>
    %44 = arith.divf %42, %43 : vector<2x32xf32>
    %45 = vector.extract_strided_slice %38 {offsets = [0, 32], sizes = [2, 32], strides = [1, 1]} : vector<2x128xf32> to vector<2x32xf32>
    %46 = arith.negf %45 : vector<2x32xf32>
    %47 = math.exp %46 : vector<2x32xf32>
    %cst_14 = arith.constant 1.000000e+00 : f32
    %48 = vector.broadcast %cst_14 : f32 to vector<2x32xf32>
    %49 = arith.addf %48, %47 : vector<2x32xf32>
    %50 = arith.divf %48, %49 : vector<2x32xf32>
    %51 = vector.extract_strided_slice %38 {offsets = [0, 64], sizes = [2, 32], strides = [1, 1]} : vector<2x128xf32> to vector<2x32xf32>
    %52 = math.tanh %51 : vector<2x32xf32>
    %53 = vector.extract_strided_slice %38 {offsets = [0, 96], sizes = [2, 32], strides = [1, 1]} : vector<2x128xf32> to vector<2x32xf32>
    %54 = arith.negf %53 : vector<2x32xf32>
    %55 = math.exp %54 : vector<2x32xf32>
    %cst_15 = arith.constant 1.000000e+00 : f32
    %56 = vector.broadcast %cst_15 : f32 to vector<2x32xf32>
    %57 = arith.addf %56, %55 : vector<2x32xf32>
    %58 = arith.divf %56, %57 : vector<2x32xf32>
    %59 = arith.mulf %50, %30 : vector<2x32xf32>
    %60 = arith.mulf %44, %52 : vector<2x32xf32>
    %61 = arith.addf %59, %60 : vector<2x32xf32>
    %62 = math.tanh %61 : vector<2x32xf32>
    %63 = arith.mulf %58, %62 : vector<2x32xf32>
    %64 = vector.shape_cast %63 : vector<2x32xf32> to vector<2x1x32xf32>
    %c0_16 = arith.constant 0 : index
    %c1 = arith.constant 1 : index
    %c0_17 = arith.constant 0 : index
    %65 = vector.load %arg3[%c0_16, %c1, %c0_17] : memref<2x8x32xf32, #tpu.memory_space<vmem>>, vector<2x1x32xf32>
    tpu.vector_store %arg3[%c0_16, %c1, %c0_17], %64 {strides = array<i32>} : memref<2x8x32xf32, #tpu.memory_space<vmem>>, vector<2x1x32xf32>,
    %66 = vector.extract_strided_slice %0 {offsets = [0, 2, 0], sizes = [2, 1, 128], strides = [1, 1, 1]} : vector<2x8x128xf32> to vector<2x1x128xf32>
    %67 = vector.shape_cast %66 : vector<2x1x128xf32> to vector<2x128xf32>
    %cst_18 = arith.constant dense<0.000000e+00> : vector<2x128xf32>
    %68 = tpu.matmul %63, %1, %cst_18 {dimension_numbers = #tpu.dot_dimension_numbers<[1], [0], [0], [1], [0, 0, 1, 1], [], []>} : vector<2x32xf32>, vector<32x128xf32>, vector<2x128xf32> -> vector<2x128xf32>
    %69 = arith.addf %67, %68 : vector<2x128xf32>
    %70 = vector.extract_strided_slice %69 {offsets = [0, 0], sizes = [2, 32], strides = [1, 1]} : vector<2x128xf32> to vector<2x32xf32>
    %71 = arith.negf %70 : vector<2x32xf32>
    %72 = math.exp %71 : vector<2x32xf32>
    %cst_19 = arith.constant 1.000000e+00 : f32
    %73 = vector.broadcast %cst_19 : f32 to vector<2x32xf32>
    %74 = arith.addf %73, %72 : vector<2x32xf32>
    %75 = arith.divf %73, %74 : vector<2x32xf32>
    %76 = vector.extract_strided_slice %69 {offsets = [0, 32], sizes = [2, 32], strides = [1, 1]} : vector<2x128xf32> to vector<2x32xf32>
    %77 = arith.negf %76 : vector<2x32xf32>
    %78 = math.exp %77 : vector<2x32xf32>
    %cst_20 = arith.constant 1.000000e+00 : f32
    %79 = vector.broadcast %cst_20 : f32 to vector<2x32xf32>
    %80 = arith.addf %79, %78 : vector<2x32xf32>
    %81 = arith.divf %79, %80 : vector<2x32xf32>
    %82 = vector.extract_strided_slice %69 {offsets = [0, 64], sizes = [2, 32], strides = [1, 1]} : vector<2x128xf32> to vector<2x32xf32>
    %83 = math.tanh %82 : vector<2x32xf32>
    %84 = vector.extract_strided_slice %69 {offsets = [0, 96], sizes = [2, 32], strides = [1, 1]} : vector<2x128xf32> to vector<2x32xf32>
    %85 = arith.negf %84 : vector<2x32xf32>
    %86 = math.exp %85 : vector<2x32xf32>
    %cst_21 = arith.constant 1.000000e+00 : f32
    %87 = vector.broadcast %cst_21 : f32 to vector<2x32xf32>
    %88 = arith.addf %87, %86 : vector<2x32xf32>
    %89 = arith.divf %87, %88 : vector<2x32xf32>
    %90 = arith.mulf %81, %61 : vector<2x32xf32>
    %91 = arith.mulf %75, %83 : vector<2x32xf32>
    %92 = arith.addf %90, %91 : vector<2x32xf32>
    %93 = math.tanh %92 : vector<2x32xf32>
    %94 = arith.mulf %89, %93 : vector<2x32xf32>
    %95 = vector.shape_cast %94 : vector<2x32xf32> to vector<2x1x32xf32>
    %c0_22 = arith.constant 0 : index
    %c2 = arith.constant 2 : index
    %c0_23 = arith.constant 0 : index
    %96 = vector.load %arg3[%c0_22, %c2, %c0_23] : memref<2x8x32xf32, #tpu.memory_space<vmem>>, vector<2x1x32xf32>
    tpu.vector_store %arg3[%c0_22, %c2, %c0_23], %95 {strides = array<i32>} : memref<2x8x32xf32, #tpu.memory_space<vmem>>, vector<2x1x32xf32>,
    %97 = vector.extract_strided_slice %0 {offsets = [0, 3, 0], sizes = [2, 1, 128], strides = [1, 1, 1]} : vector<2x8x128xf32> to vector<2x1x128xf32>
    %98 = vector.shape_cast %97 : vector<2x1x128xf32> to vector<2x128xf32>
    %cst_24 = arith.constant dense<0.000000e+00> : vector<2x128xf32>
    %99 = tpu.matmul %94, %1, %cst_24 {dimension_numbers = #tpu.dot_dimension_numbers<[1], [0], [0], [1], [0, 0, 1, 1], [], []>} : vector<2x32xf32>, vector<32x128xf32>, vector<2x128xf32> -> vector<2x128xf32>
    %100 = arith.addf %98, %99 : vector<2x128xf32>
    %101 = vector.extract_strided_slice %100 {offsets = [0, 0], sizes = [2, 32], strides = [1, 1]} : vector<2x128xf32> to vector<2x32xf32>
    %102 = arith.negf %101 : vector<2x32xf32>
    %103 = math.exp %102 : vector<2x32xf32>
    %cst_25 = arith.constant 1.000000e+00 : f32
    %104 = vector.broadcast %cst_25 : f32 to vector<2x32xf32>
    %105 = arith.addf %104, %103 : vector<2x32xf32>
    %106 = arith.divf %104, %105 : vector<2x32xf32>
    %107 = vector.extract_strided_slice %100 {offsets = [0, 32], sizes = [2, 32], strides = [1, 1]} : vector<2x128xf32> to vector<2x32xf32>
    %108 = arith.negf %107 : vector<2x32xf32>
    %109 = math.exp %108 : vector<2x32xf32>
    %cst_26 = arith.constant 1.000000e+00 : f32
    %110 = vector.broadcast %cst_26 : f32 to vector<2x32xf32>
    %111 = arith.addf %110, %109 : vector<2x32xf32>
    %112 = arith.divf %110, %111 : vector<2x32xf32>
    %113 = vector.extract_strided_slice %100 {offsets = [0, 64], sizes = [2, 32], strides = [1, 1]} : vector<2x128xf32> to vector<2x32xf32>
    %114 = math.tanh %113 : vector<2x32xf32>
    %115 = vector.extract_strided_slice %100 {offsets = [0, 96], sizes = [2, 32], strides = [1, 1]} : vector<2x128xf32> to vector<2x32xf32>
    %116 = arith.negf %115 : vector<2x32xf32>
    %117 = math.exp %116 : vector<2x32xf32>
    %cst_27 = arith.constant 1.000000e+00 : f32
    %118 = vector.broadcast %cst_27 : f32 to vector<2x32xf32>
    %119 = arith.addf %118, %117 : vector<2x32xf32>
    %120 = arith.divf %118, %119 : vector<2x32xf32>
    %121 = arith.mulf %112, %92 : vector<2x32xf32>
    %122 = arith.mulf %106, %114 : vector<2x32xf32>
    %123 = arith.addf %121, %122 : vector<2x32xf32>
    %124 = math.tanh %123 : vector<2x32xf32>
    %125 = arith.mulf %120, %124 : vector<2x32xf32>
    %126 = vector.shape_cast %125 : vector<2x32xf32> to vector<2x1x32xf32>
    %c0_28 = arith.constant 0 : index
    %c3 = arith.constant 3 : index
    %c0_29 = arith.constant 0 : index
    %127 = vector.load %arg3[%c0_28, %c3, %c0_29] : memref<2x8x32xf32, #tpu.memory_space<vmem>>, vector<2x1x32xf32>
    tpu.vector_store %arg3[%c0_28, %c3, %c0_29], %126 {strides = array<i32>} : memref<2x8x32xf32, #tpu.memory_space<vmem>>, vector<2x1x32xf32>,
    %128 = vector.extract_strided_slice %0 {offsets = [0, 4, 0], sizes = [2, 1, 128], strides = [1, 1, 1]} : vector<2x8x128xf32> to vector<2x1x128xf32>
    %129 = vector.shape_cast %128 : vector<2x1x128xf32> to vector<2x128xf32>
    %cst_30 = arith.constant dense<0.000000e+00> : vector<2x128xf32>
    %130 = tpu.matmul %125, %1, %cst_30 {dimension_numbers = #tpu.dot_dimension_numbers<[1], [0], [0], [1], [0, 0, 1, 1], [], []>} : vector<2x32xf32>, vector<32x128xf32>, vector<2x128xf32> -> vector<2x128xf32>
    %131 = arith.addf %129, %130 : vector<2x128xf32>
    %132 = vector.extract_strided_slice %131 {offsets = [0, 0], sizes = [2, 32], strides = [1, 1]} : vector<2x128xf32> to vector<2x32xf32>
    %133 = arith.negf %132 : vector<2x32xf32>
    %134 = math.exp %133 : vector<2x32xf32>
    %cst_31 = arith.constant 1.000000e+00 : f32
    %135 = vector.broadcast %cst_31 : f32 to vector<2x32xf32>
    %136 = arith.addf %135, %134 : vector<2x32xf32>
    %137 = arith.divf %135, %136 : vector<2x32xf32>
    %138 = vector.extract_strided_slice %131 {offsets = [0, 32], sizes = [2, 32], strides = [1, 1]} : vector<2x128xf32> to vector<2x32xf32>
    %139 = arith.negf %138 : vector<2x32xf32>
    %140 = math.exp %139 : vector<2x32xf32>
    %cst_32 = arith.constant 1.000000e+00 : f32
    %141 = vector.broadcast %cst_32 : f32 to vector<2x32xf32>
    %142 = arith.addf %141, %140 : vector<2x32xf32>
    %143 = arith.divf %141, %142 : vector<2x32xf32>
    %144 = vector.extract_strided_slice %131 {offsets = [0, 64], sizes = [2, 32], strides = [1, 1]} : vector<2x128xf32> to vector<2x32xf32>
    %145 = math.tanh %144 : vector<2x32xf32>
    %146 = vector.extract_strided_slice %131 {offsets = [0, 96], sizes = [2, 32], strides = [1, 1]} : vector<2x128xf32> to vector<2x32xf32>
    %147 = arith.negf %146 : vector<2x32xf32>
    %148 = math.exp %147 : vector<2x32xf32>
    %cst_33 = arith.constant 1.000000e+00 : f32
    %149 = vector.broadcast %cst_33 : f32 to vector<2x32xf32>
    %150 = arith.addf %149, %148 : vector<2x32xf32>
    %151 = arith.divf %149, %150 : vector<2x32xf32>
    %152 = arith.mulf %143, %123 : vector<2x32xf32>
    %153 = arith.mulf %137, %145 : vector<2x32xf32>
    %154 = arith.addf %152, %153 : vector<2x32xf32>
    %155 = math.tanh %154 : vector<2x32xf32>
    %156 = arith.mulf %151, %155 : vector<2x32xf32>
    %157 = vector.shape_cast %156 : vector<2x32xf32> to vector<2x1x32xf32>
    %c0_34 = arith.constant 0 : index
    %c4 = arith.constant 4 : index
    %c0_35 = arith.constant 0 : index
    %158 = vector.load %arg3[%c0_34, %c4, %c0_35] : memref<2x8x32xf32, #tpu.memory_space<vmem>>, vector<2x1x32xf32>
    tpu.vector_store %arg3[%c0_34, %c4, %c0_35], %157 {strides = array<i32>} : memref<2x8x32xf32, #tpu.memory_space<vmem>>, vector<2x1x32xf32>,
    %159 = vector.extract_strided_slice %0 {offsets = [0, 5, 0], sizes = [2, 1, 128], strides = [1, 1, 1]} : vector<2x8x128xf32> to vector<2x1x128xf32>
    %160 = vector.shape_cast %159 : vector<2x1x128xf32> to vector<2x128xf32>
    %cst_36 = arith.constant dense<0.000000e+00> : vector<2x128xf32>
    %161 = tpu.matmul %156, %1, %cst_36 {dimension_numbers = #tpu.dot_dimension_numbers<[1], [0], [0], [1], [0, 0, 1, 1], [], []>} : vector<2x32xf32>, vector<32x128xf32>, vector<2x128xf32> -> vector<2x128xf32>
    %162 = arith.addf %160, %161 : vector<2x128xf32>
    %163 = vector.extract_strided_slice %162 {offsets = [0, 0], sizes = [2, 32], strides = [1, 1]} : vector<2x128xf32> to vector<2x32xf32>
    %164 = arith.negf %163 : vector<2x32xf32>
    %165 = math.exp %164 : vector<2x32xf32>
    %cst_37 = arith.constant 1.000000e+00 : f32
    %166 = vector.broadcast %cst_37 : f32 to vector<2x32xf32>
    %167 = arith.addf %166, %165 : vector<2x32xf32>
    %168 = arith.divf %166, %167 : vector<2x32xf32>
    %169 = vector.extract_strided_slice %162 {offsets = [0, 32], sizes = [2, 32], strides = [1, 1]} : vector<2x128xf32> to vector<2x32xf32>
    %170 = arith.negf %169 : vector<2x32xf32>
    %171 = math.exp %170 : vector<2x32xf32>
    %cst_38 = arith.constant 1.000000e+00 : f32
    %172 = vector.broadcast %cst_38 : f32 to vector<2x32xf32>
    %173 = arith.addf %172, %171 : vector<2x32xf32>
    %174 = arith.divf %172, %173 : vector<2x32xf32>
    %175 = vector.extract_strided_slice %162 {offsets = [0, 64], sizes = [2, 32], strides = [1, 1]} : vector<2x128xf32> to vector<2x32xf32>
    %176 = math.tanh %175 : vector<2x32xf32>
    %177 = vector.extract_strided_slice %162 {offsets = [0, 96], sizes = [2, 32], strides = [1, 1]} : vector<2x128xf32> to vector<2x32xf32>
    %178 = arith.negf %177 : vector<2x32xf32>
    %179 = math.exp %178 : vector<2x32xf32>
    %cst_39 = arith.constant 1.000000e+00 : f32
    %180 = vector.broadcast %cst_39 : f32 to vector<2x32xf32>
    %181 = arith.addf %180, %179 : vector<2x32xf32>
    %182 = arith.divf %180, %181 : vector<2x32xf32>
    %183 = arith.mulf %174, %154 : vector<2x32xf32>
    %184 = arith.mulf %168, %176 : vector<2x32xf32>
    %185 = arith.addf %183, %184 : vector<2x32xf32>
    %186 = math.tanh %185 : vector<2x32xf32>
    %187 = arith.mulf %182, %186 : vector<2x32xf32>
    %188 = vector.shape_cast %187 : vector<2x32xf32> to vector<2x1x32xf32>
    %c0_40 = arith.constant 0 : index
    %c5 = arith.constant 5 : index
    %c0_41 = arith.constant 0 : index
    %189 = vector.load %arg3[%c0_40, %c5, %c0_41] : memref<2x8x32xf32, #tpu.memory_space<vmem>>, vector<2x1x32xf32>
    tpu.vector_store %arg3[%c0_40, %c5, %c0_41], %188 {strides = array<i32>} : memref<2x8x32xf32, #tpu.memory_space<vmem>>, vector<2x1x32xf32>,
    %190 = vector.extract_strided_slice %0 {offsets = [0, 6, 0], sizes = [2, 1, 128], strides = [1, 1, 1]} : vector<2x8x128xf32> to vector<2x1x128xf32>
    %191 = vector.shape_cast %190 : vector<2x1x128xf32> to vector<2x128xf32>
    %cst_42 = arith.constant dense<0.000000e+00> : vector<2x128xf32>
    %192 = tpu.matmul %187, %1, %cst_42 {dimension_numbers = #tpu.dot_dimension_numbers<[1], [0], [0], [1], [0, 0, 1, 1], [], []>} : vector<2x32xf32>, vector<32x128xf32>, vector<2x128xf32> -> vector<2x128xf32>
    %193 = arith.addf %191, %192 : vector<2x128xf32>
    %194 = vector.extract_strided_slice %193 {offsets = [0, 0], sizes = [2, 32], strides = [1, 1]} : vector<2x128xf32> to vector<2x32xf32>
    %195 = arith.negf %194 : vector<2x32xf32>
    %196 = math.exp %195 : vector<2x32xf32>
    %cst_43 = arith.constant 1.000000e+00 : f32
    %197 = vector.broadcast %cst_43 : f32 to vector<2x32xf32>
    %198 = arith.addf %197, %196 : vector<2x32xf32>
    %199 = arith.divf %197, %198 : vector<2x32xf32>
    %200 = vector.extract_strided_slice %193 {offsets = [0, 32], sizes = [2, 32], strides = [1, 1]} : vector<2x128xf32> to vector<2x32xf32>
    %201 = arith.negf %200 : vector<2x32xf32>
    %202 = math.exp %201 : vector<2x32xf32>
    %cst_44 = arith.constant 1.000000e+00 : f32
    %203 = vector.broadcast %cst_44 : f32 to vector<2x32xf32>
    %204 = arith.addf %203, %202 : vector<2x32xf32>
    %205 = arith.divf %203, %204 : vector<2x32xf32>
    %206 = vector.extract_strided_slice %193 {offsets = [0, 64], sizes = [2, 32], strides = [1, 1]} : vector<2x128xf32> to vector<2x32xf32>
    %207 = math.tanh %206 : vector<2x32xf32>
    %208 = vector.extract_strided_slice %193 {offsets = [0, 96], sizes = [2, 32], strides = [1, 1]} : vector<2x128xf32> to vector<2x32xf32>
    %209 = arith.negf %208 : vector<2x32xf32>
    %210 = math.exp %209 : vector<2x32xf32>
    %cst_45 = arith.constant 1.000000e+00 : f32
    %211 = vector.broadcast %cst_45 : f32 to vector<2x32xf32>
    %212 = arith.addf %211, %210 : vector<2x32xf32>
    %213 = arith.divf %211, %212 : vector<2x32xf32>
    %214 = arith.mulf %205, %185 : vector<2x32xf32>
    %215 = arith.mulf %199, %207 : vector<2x32xf32>
    %216 = arith.addf %214, %215 : vector<2x32xf32>
    %217 = math.tanh %216 : vector<2x32xf32>
    %218 = arith.mulf %213, %217 : vector<2x32xf32>
    %219 = vector.shape_cast %218 : vector<2x32xf32> to vector<2x1x32xf32>
    %c0_46 = arith.constant 0 : index
    %c6 = arith.constant 6 : index
    %c0_47 = arith.constant 0 : index
    %220 = vector.load %arg3[%c0_46, %c6, %c0_47] : memref<2x8x32xf32, #tpu.memory_space<vmem>>, vector<2x1x32xf32>
    tpu.vector_store %arg3[%c0_46, %c6, %c0_47], %219 {strides = array<i32>} : memref<2x8x32xf32, #tpu.memory_space<vmem>>, vector<2x1x32xf32>,
    %221 = vector.extract_strided_slice %0 {offsets = [0, 7, 0], sizes = [2, 1, 128], strides = [1, 1, 1]} : vector<2x8x128xf32> to vector<2x1x128xf32>
    %222 = vector.shape_cast %221 : vector<2x1x128xf32> to vector<2x128xf32>
    %cst_48 = arith.constant dense<0.000000e+00> : vector<2x128xf32>
    %223 = tpu.matmul %218, %1, %cst_48 {dimension_numbers = #tpu.dot_dimension_numbers<[1], [0], [0], [1], [0, 0, 1, 1], [], []>} : vector<2x32xf32>, vector<32x128xf32>, vector<2x128xf32> -> vector<2x128xf32>
    %224 = arith.addf %222, %223 : vector<2x128xf32>
    %225 = vector.extract_strided_slice %224 {offsets = [0, 0], sizes = [2, 32], strides = [1, 1]} : vector<2x128xf32> to vector<2x32xf32>
    %226 = arith.negf %225 : vector<2x32xf32>
    %227 = math.exp %226 : vector<2x32xf32>
    %cst_49 = arith.constant 1.000000e+00 : f32
    %228 = vector.broadcast %cst_49 : f32 to vector<2x32xf32>
    %229 = arith.addf %228, %227 : vector<2x32xf32>
    %230 = arith.divf %228, %229 : vector<2x32xf32>
    %231 = vector.extract_strided_slice %224 {offsets = [0, 32], sizes = [2, 32], strides = [1, 1]} : vector<2x128xf32> to vector<2x32xf32>
    %232 = arith.negf %231 : vector<2x32xf32>
    %233 = math.exp %232 : vector<2x32xf32>
    %cst_50 = arith.constant 1.000000e+00 : f32
    %234 = vector.broadcast %cst_50 : f32 to vector<2x32xf32>
    %235 = arith.addf %234, %233 : vector<2x32xf32>
    %236 = arith.divf %234, %235 : vector<2x32xf32>
    %237 = vector.extract_strided_slice %224 {offsets = [0, 64], sizes = [2, 32], strides = [1, 1]} : vector<2x128xf32> to vector<2x32xf32>
    %238 = math.tanh %237 : vector<2x32xf32>
    %239 = vector.extract_strided_slice %224 {offsets = [0, 96], sizes = [2, 32], strides = [1, 1]} : vector<2x128xf32> to vector<2x32xf32>
    %240 = arith.negf %239 : vector<2x32xf32>
    %241 = math.exp %240 : vector<2x32xf32>
    %cst_51 = arith.constant 1.000000e+00 : f32
    %242 = vector.broadcast %cst_51 : f32 to vector<2x32xf32>
    %243 = arith.addf %242, %241 : vector<2x32xf32>
    %244 = arith.divf %242, %243 : vector<2x32xf32>
    %245 = arith.mulf %236, %216 : vector<2x32xf32>
    %246 = arith.mulf %230, %238 : vector<2x32xf32>
    %247 = arith.addf %245, %246 : vector<2x32xf32>
    %248 = math.tanh %247 : vector<2x32xf32>
    %249 = arith.mulf %244, %248 : vector<2x32xf32>
    %250 = vector.shape_cast %249 : vector<2x32xf32> to vector<2x1x32xf32>
    %c0_52 = arith.constant 0 : index
    %c7 = arith.constant 7 : index
    %c0_53 = arith.constant 0 : index
    %251 = vector.load %arg3[%c0_52, %c7, %c0_53] : memref<2x8x32xf32, #tpu.memory_space<vmem>>, vector<2x1x32xf32>
    tpu.vector_store %arg3[%c0_52, %c7, %c0_53], %250 {strides = array<i32>} : memref<2x8x32xf32, #tpu.memory_space<vmem>>, vector<2x1x32xf32>,
    return
  }
  func.func @transform_0(%arg0: i32) -> (i32, i32, i32) {
    %c0_i32 = arith.constant 0 : i32
    %c0_i32_0 = arith.constant 0 : i32
    %c0_i32_1 = arith.constant 0 : i32
    %c0_i32_2 = arith.constant 0 : i32
    return %c0_i32, %c0_i32_0, %c0_i32_1 : i32, i32, i32
  }
  func.func @transform_1(%arg0: i32) -> (i32, i32) {
    %c0_i32 = arith.constant 0 : i32
    %c0_i32_0 = arith.constant 0 : i32
    %c0_i32_1 = arith.constant 0 : i32
    return %c0_i32, %c0_i32_0 : i32, i32
  }
  func.func @transform_2(%arg0: i32) -> (i32, i32, i32) {
    %c0_i32 = arith.constant 0 : i32
    %c0_i32_0 = arith.constant 0 : i32
    %c0_i32_1 = arith.constant 0 : i32
    %c0_i32_2 = arith.constant 0 : i32
    return %c0_i32, %c0_i32_0, %c0_i32_1 : i32, i32, i32
  }
}

module attributes {stable_mosaic.version = 11 : i64} {
  func.func @_fc_kernel(%arg0: i32, %arg1: memref<16x32xf32, #tpu.memory_space<vmem>>, %arg2: memref<32x128xf32, #tpu.memory_space<vmem>>, %arg3: memref<1x128xf32, #tpu.memory_space<vmem>>, %arg4: memref<16x128xf32, #tpu.memory_space<vmem>>) attributes {dimension_semantics = [#tpu.dimension_semantics<parallel>], iteration_bounds = array<i64: 2>, scalar_prefetch = 0 : i64, scratch_operands = 0 : i64, tpu.core_type = #tpu.core_type<tc>, window_params = [{pipeline_mode = #tpu.pipeline_mode<synchronous>, transform_indices = @transform_0, window_bounds = array<i64: 16, 32>}, {transform_indices = @transform_1, window_bounds = array<i64: 32, 128>}, {transform_indices = @transform_2, window_bounds = array<i64: 1, 128>}, {transform_indices = @transform_3, window_bounds = array<i64: 16, 128>}]} {
    %c0 = arith.constant 0 : index
    %c0_0 = arith.constant 0 : index
    %0 = vector.load %arg1[%c0, %c0_0] : memref<16x32xf32, #tpu.memory_space<vmem>>, vector<16x32xf32>
    %c0_1 = arith.constant 0 : index
    %c0_2 = arith.constant 0 : index
    %1 = vector.load %arg2[%c0_1, %c0_2] : memref<32x128xf32, #tpu.memory_space<vmem>>, vector<32x128xf32>
    %cst = arith.constant dense<0.000000e+00> : vector<16x128xf32>
    %2 = tpu.matmul %0, %1, %cst {dimension_numbers = #tpu.dot_dimension_numbers<[1], [0], [0], [1], [0, 0, 1, 1], [], []>} : vector<16x32xf32>, vector<32x128xf32>, vector<16x128xf32> -> vector<16x128xf32>
    %c0_3 = arith.constant 0 : index
    %c0_4 = arith.constant 0 : index
    %3 = vector.load %arg3[%c0_3, %c0_4] : memref<1x128xf32, #tpu.memory_space<vmem>>, vector<1x128xf32>
    %4 = vector.broadcast %3 : vector<1x128xf32> to vector<16x128xf32>
    %5 = arith.addf %2, %4 : vector<16x128xf32>
    %c0_5 = arith.constant 0 : index
    %c0_6 = arith.constant 0 : index
    %6 = vector.load %arg4[%c0_5, %c0_6] : memref<16x128xf32, #tpu.memory_space<vmem>>, vector<16x128xf32>
    tpu.vector_store %arg4[%c0_5, %c0_6], %5 {strides = array<i32>} : memref<16x128xf32, #tpu.memory_space<vmem>>, vector<16x128xf32>,
    return
  }
  func.func @transform_0(%arg0: i32) -> (i32, i32) {
    %c0_i32 = arith.constant 0 : i32
    %c0_i32_0 = arith.constant 0 : i32
    %c0_i32_1 = arith.constant 0 : i32
    return %c0_i32, %c0_i32_0 : i32, i32
  }
  func.func @transform_1(%arg0: i32) -> (i32, i32) {
    %c0_i32 = arith.constant 0 : i32
    %c0_i32_0 = arith.constant 0 : i32
    return %c0_i32, %arg0 : i32, i32
  }
  func.func @transform_2(%arg0: i32) -> (i32, i32) {
    %c0_i32 = arith.constant 0 : i32
    %c0_i32_0 = arith.constant 0 : i32
    return %c0_i32, %arg0 : i32, i32
  }
  func.func @transform_3(%arg0: i32) -> (i32, i32) {
    %c0_i32 = arith.constant 0 : i32
    %c0_i32_0 = arith.constant 0 : i32
    return %c0_i32, %arg0 : i32, i32
  }
}

</mosaic_0001>

<bundles_post_ra>
// kernel: decoder_pallas.3
= control target key start
LH: loop header
LB: loop body
LE: loop exit
PB: predicated region body
PF: predicated region fallthrough
CT: control target
= control target key end

     0   :  { %8 = vsyncpa [#allocation4], 0  ;;  %s709_s0 = inlined_call_operand.vmem [shape: f32[16,32], index: 0, kind: input, shape index: {}]   ;;  %s710_s1 = inlined_call_operand.vmem [shape: f32[32,256], index: 1, kind: input, shape index: {}]   ;;  %s711_s2 = inlined_call_operand.vmem [shape: f32[1,256], index: 2, kind: input, shape index: {}]   ;;  %s712_s3 = inlined_call_operand.hbm [shape: f32[16,256], index: 3, kind: output, shape index: {}]  }
   0x1   :  { %10 = vsyncpa [#allocation4 + $0x1], 0  ;;  %s586_s12 = smov 0   ;;  %s588_s13 = smov 0  }
   0x2   :  { %s590_s14 = smov 0   ;;  %s592_s15 = smov 0  }
   0x3 LB: > { %s607_s16 = sadd.s32 4294967295, %s560_s15   ;;  %s416_s17 = sadd.s32 4294967294, %s560_s15   ;;  %s560_s15 = sphi %s592_s15, %s718_s15   ;;  %s556_s14 = sphi %s590_s14, %s717_s14   ;;  %s552_s13 = sphi %s588_s13, %s716_s13   ;;  %s548_s12 = sphi %s586_s12, %s715_s12  }
   0x4   : > { %s611_s18 = sadd.s32 1, %s560_s15   ;;  %s44_s19 = sadd.s32 1, %s556_s14 }
   0x5   : > { %s41_s20 = ssub.s32 %s560_s15, %s611_s18  ;;  %p51_p0 = scmp.ne.s32.totalorder %s556_s14, %s552_s13 }
   0x6   : > { %p42_p1 = scmp.eq.s32.totalorder %s41_s20, 0  ;;  %p52_p2 = scmp.eq.s32.totalorder %s560_s15, 0 }
   0x7   : > { %p107_p3 = scmp.eq.s32.totalorder %s607_s16, 1  ;;  %p112_p4 = scmp.ne.s32.totalorder %s552_s13, %s548_s12 }
   0x8   : > { %s623_s21 = scalar_select %p42_p1, %s556_s14, %s44_s19  }
   0x9   : > { %p53_p5 = por %p52_p2, %p51_p0  ;;  %p625_p6 = por %p107_p3, %p51_p0 }
   0xa   : > { %p113_p7 = scmp.eq.s32.totalorder %s416_s17, 1  ;;  %p418_p9 = scmp.ge.s32.totalorder %s560_s15, 2 }
   0xc   : > { %p629_p8 = por %p113_p7, %p112_p4  ;;  %132 = sbr.rel (%p418_p9) target bundleno = 26 (0x1a), region = 20 }
  0x13   : > { %135 = sbr.rel (!%p53_p5) target bundleno = 26 (0x1a), region = 24  ;;  %s137_s24 = sand.u32 (%p53_p5), 1, %s556_s14  }
  0x14   : > { %s420_s25 = sshll.u32 (%p53_p5), %s560_s15, 3  ;;  %s419_s26 = sshll.u32 (%p53_p5), %s137_s24, 5 }
  0x15   : > { %s141_s29 = scalar_lea.vmem (%p53_p5), %s710_s1, %s420_s25  ;;  %s139_s30 = scalar_lea.vmem (%p53_p5), [#allocation2], %s419_s26 }
  0x16   : > { %v175_v0 = vld [vmem:[%s141_s29] sm:$0xff] (%p53_p5)  ;;  %v177_v1 = vld [vmem:[%s141_s29 + $0x10] sm:$0xff] (%p53_p5) }
  0x17   : > { %v179_v2 = vld [vmem:[%s141_s29 + $0x20] sm:$0xff] (%p53_p5)  ;;  %176 = vst [vmem:[%s139_s30] sm:$0xff] (%p53_p5), %v175_v0  ;;  %178 = vst [vmem:[%s139_s30 + $0x8] sm:$0xff] (%p53_p5), %v177_v1  ;;  %v181_v3 = vld [vmem:[%s141_s29 + $0x30] sm:$0xff] (%p53_p5) }
  0x18   : > { %180 = vst [vmem:[%s139_s30 + $0x10] sm:$0xff] (%p53_p5), %v179_v2  ;;  %182 = vst [vmem:[%s139_s30 + $0x18] sm:$0xff] (%p53_p5), %v181_v3 }
  0x1a PF: > { %p421_p10 = scmp.ge.s32.totalorder %s560_s15, 1  ;;  %p193_p11 = scmp.lt.s32.totalorder %s560_s15, 3 }
  0x1c   : > { %p194_p12 = pnand %p421_p10, %p193_p11 }
  0x1d   : > { %s644_s4 = sand.u32 (!%p194_p12), 1, %s552_s13   ;;  %v229_v4 = vld [vmem:[%s709_s0] sm:$0xff] (!%p194_p12)  ;;  %vm242_vm0 = vcmask (!%p194_p12), 261120   ;;  %v230_v11 = vld [vmem:[%s709_s0 + $0x8] sm:$0xff] (!%p194_p12)  ;;  %p226_p13 = scmp.lt.s32.totalorder (!%p194_p12), %s607_s16, 1 }
  0x1e   : > { %197 = sbr.rel (%p194_p12) target bundleno = 274 (0x112), region = 66  ;;  %s422_s7 = sshll.u32 (!%p194_p12), %s644_s4, 5  ;;  %445 = vmatprep.mubr.msk.f32.mxu0 (!%p194_p12), %vm242_vm0, %v229_v4 }
  0x1f   : > { %s202_s8 = scalar_lea.vmem (!%p194_p12), [#allocation2], %s422_s7  ;;  %s423_s11 = sshll.u32 (!%p194_p12), %s644_s4, 4 }
  0x20   : > { %v231_v5 = vld [vmem:[%s202_s8] sm:$0xff] (!%p194_p12)  ;;  %v232_v6 = vld [vmem:[%s202_s8 + $0x8] sm:$0xff] (!%p194_p12)  ;;  %v233_v7 = vld [vmem:[%s202_s8 + $0x10] sm:$0xff] (!%p194_p12)  ;;  %s225_s25 = scalar_lea.vmem (!%p194_p12), [#allocation3], %s423_s11  ;;  %s428_s27 = sshll.u32 (!%p194_p12), %s607_s16, 7 }
  0x21   : > { %v448_v8 = vpack.c.bf16 (!%p194_p12), %v232_v6, %v231_v5  ;;  %v234_v9 = vld [vmem:[%s202_s8 + $0x18] sm:$0xff] (!%p194_p12)  ;;  %s339_s26 = sshll.u32 (!%p194_p12), %s225_s25, 4  ;;  %s665_s30 = scalar_lea.hbm (!%p194_p12), %s712_s3, %s428_s27  ;;  %s660_s26 = int_to_ptr.vmem [resolvable:$true] %s339_s26 }
  0x22   : > { %v452_v10 = vpack.c.bf16 (!%p194_p12), %v234_v9, %v233_v7  ;;  %s327_s5 = scalar_lea.sflag (!%p194_p12), [#allocation4], %s644_s4  ;;  %s498_s6 = scalar_lea.vmem (!%p194_p12), %s660_s26, 256 }
  0x23   : > { %449 = vmatprep.subr.bf16.mxu0 (!%p194_p12), %v448_v8  ;;  %p499_p0 = scmp.ne.s32.totalorder (!%p194_p12), %s660_s26, %s498_s6 }
  0x24   : > { %451 = vmatpush3.bf16.msra.mxu0 (!%p194_p12), %v448_v8 }
  0x25   : > { %453 = vmatprep.subr.bf16.mxu0 %v452_v10  ;;  %s227_s17 = scalar_select %p226_p13, %s607_s16, 1 }
  0x26   : > { %p500_p1 = pnand %p499_p0, %p625_p6  ;;  %s562_s16 = smov [#allocation3]  }
  0x27   : > { %s228_s24 = scalar_lea.vmem %s711_s2, %s227_s17  ;;  %s502_s7 = sshll.u32 %s562_s16, 4  ;;  %s503_s7 = int_to_ptr.vmem [resolvable:$false] %s502_s7 }
  0x28   : > { %455 = vmatpush3.bf16.msra.mxu0 %v452_v10  ;;  %v424_v12 = vld [vmem:[%s228_s24] ss:$0 sm:$0xff]  ;;  %p501_p2 = pneg %p500_p1  ;;  %s504_s8 = scalar_lea.vmem %s503_s7, 512 }
  0x29   : > { %p505_p3 = scmp.lt.s32.totalorder %s660_s26, %s503_s7  ;;  %p506_p4 = scmp.lt.s32.totalorder %s504_s8, %s498_s6 }
  0x2b   : > { %446 = vmatmul.mubr.msk.f32.vlgmr.msra.gmra.mrb[0].mxu0 %vm242_vm0, %v230_v11  ;;  %p507_p5 = por %p506_p4, %p505_p3 }
  0x2d   : > { %p508_p7 = pnand %p507_p5, %p501_p2 }
  0xfe   : > { %v447_v13 = vpop.f32.mrb[0].mxu0 }
  0xff   : > { %v321_v14 = vadd.f32 %v447_v13, %v424_v12  ;;  %v315_v15 = vpop.f32.mrb[1].mxu0 }
 0x100   : > { %v316_v16 = vadd.f32 %v424_v12, %v315_v15 }
 0x101   : > { %325 = vst [vmem:[%s225_s25 + $0x8] sm:$0xff] %v321_v14 }
 0x102   : > { %324 = vst [vmem:[%s225_s25] sm:$0xff] %v316_v16 }
 0x103   : > { %511 = shalt.err (!%p508_p7)
}
 0x104   : > { %s512_s9 = scalar_lea.hbm %s665_s30, 256  ;;  %s516_s17 = scalar_lea.hbm %s712_s3, 512 }
 0x105   : > { %p513_p10 = scmp.ne.s32.totalorder %s665_s30, %s512_s9  ;;  %p517_p13 = scmp.lt.u32.totalorder %s665_s30, %s712_s3 }
 0x106   : > { %p518_p0 = scmp.lt.u32.totalorder %s516_s17, %s512_s9  ;;  %p520_p2 = scmp.lt.u32.totalorder %s512_s9, %s665_s30 }
 0x107   : > { %p514_p11 = pnand %p513_p10, %p625_p6 }
 0x108   : > { %p519_p1 = por %p518_p0, %p517_p13 }
 0x109   : > { %p515_p12 = pneg %p514_p11 }
 0x10a   : > { %p521_p3 = por %p520_p2, %p519_p1 }
 0x10c   : > { %p522_p4 = pnand %p521_p3, %p515_p12 }
 0x10e   : > { %525 = shalt.err (!%p522_p4)
}
 0x10f   : > { %s563_s24 = smov 128   ;;  %s564_s25 = smov 256  }
 0x110   : > { %s565_s27 = smov 8  }
 0x111   : > { %456 = dma.vmem_to_hbm [thread:$0]  (%p625_p6), %s660_s26, 256, %s665_s30, %s327_s5, %s563_s24, %s564_s25, %s565_s27  }
 0x112 PF: > { %s354_s28 = sand.u32 1, %s548_s12   ;;  %p459_p5 = pnand %p418_p9, %p629_p8 }
 0x113   : > { %s355_s29 = scalar_lea.sflag [#allocation4], %s354_s28 }
 0x114   : > { %543 = dma.done.wait (!%p459_p5), %s355_s29, 256  }
 0x115   : > { %545 = vsyncadd (!%p459_p5), %s355_s29, 4294967040  ;;  %p13_p7 = scmp.ge.s32.totalorder %s611_s18, 4   ;;  %s715_s12 = smov %s552_s13 }
 0x116   : > { %s716_s13 = smov %s556_s14  ;;  %s717_s14 = smov %s623_s21 }
 0x117   : > { %s718_s15 = smov %s611_s18  ;;  %15 = sbr.rel (!%p13_p7) target bundleno = 3 (0x3), region = 113 }
 0x11e   :  { %360 = vsyncpa [#allocation4], 1 }
 0x11f   :  { %362 = vsyncpa [#allocation4 + $0x1], 1 }

// kernel: decoder_pallas.2
= control target key start
LH: loop header
LB: loop body
LE: loop exit
PB: predicated region body
PF: predicated region fallthrough
CT: control target
= control target key end

     0   :  { %v1533_v0 = vmov 0.0|0.0   ;;  %vm1534_vm0 = vmmov 0   ;;  %v1535_v4 = vmov 0.0   ;;  %s1536_s20 = smov 64   ;;  %vm157_vm1 = vcmask 1041409   ;;  %s1833_s1 = inlined_call_operand.vmem [shape: f32[32,128], index: 1, kind: input, shape index: {}]   ;;  %s1834_s0 = inlined_call_operand.vmem [shape: f32[2,8,128], index: 0, kind: input, shape index: {}]   ;;  %s1835_s2 = inlined_call_operand.vmem [shape: f32[2,8,32], index: 2, kind: output, shape index: {}]  }
   0x1   :  { %1352 = vmatprep.subr.bf16.mxu0 %v1533_v0  ;;  %v13_v1 = vld [vmem:[%s1833_s1] sm:$0xff]  ;;  %v14_v2 = vld [vmem:[%s1833_s1 + $0x8] sm:$0xff]  ;;  %v15_v3 = vld [vmem:[%s1833_s1 + $0x10] sm:$0xff]  ;;  %1272 = vmatprep.mubr.msk.f32.mxu0 %vm1534_vm0, %v1535_v4  ;;  %vm17_vm2 = vcmask 261120   ;;  %vm153_vm3 = vcmask 253952   ;;  %vm301_vm4 = vcmask 254977  }
   0x2   :  { %v1565_v5 = vpack.c.bf16 %v14_v2, %v13_v1  ;;  %v16_v6 = vld [vmem:[%s1833_s1 + $0x18] sm:$0xff]  ;;  %1358 = vmatprep.subr.bf16.mxu1 %v1533_v0  ;;  %1283 = vmatprep.mubr.msk.f32.mxu1 %vm1534_vm0, %v1535_v4  ;;  %v1593_v8 = vld [vmem:[%s1834_s0 + $0x8] sm:$0xff]  ;;  %v1598_v12 = vld [vmem:[%s1834_s0] sm:$0xff]  ;;  %s1537_s0 = smov 32   ;;  %vm449_vm5 = vcmask 256002   ;;  %vm598_vm6 = vcmask 257027  }
   0x3   :  { %v1574_v7 = vpack.c.bf16 %v16_v6, %v15_v3  ;;  %vm747_vm7 = vcmask 258052   ;;  %vm896_vm8 = vcmask 259077   ;;  %vm1045_vm9 = vcmask 260102  }
   0x4   :  { %1354 = vmatpush3.bf16.msra.mxu0 %v1565_v5  ;;  %1360 = vmatpush3.bf16.msra.mxu1 %v1565_v5  ;;  %vm1194_vm10 = vcmask 261127  }
   0x5   :  { %1355 = vmatprep.subr.bf16.mxu0 %v1533_v0  ;;  %1361 = vmatprep.subr.bf16.mxu1 %v1533_v0 }
   0x8   :  { %1357 = vmatpush3.bf16.msra.mxu0 %v1574_v7  ;;  %1363 = vmatpush3.bf16.msra.mxu1 %v1574_v7 }
   0x9   :  { %1364 = vmatprep.subr.bf16.mxu0 %v1533_v0  ;;  %1370 = vmatprep.subr.bf16.mxu1 %v1533_v0 }
   0xb   :  { %1273 = vmatmul.mubr.f32.vlgmr.msra.gmra.mrb[0].mxu0 %v1535_v4 }
   0xc   :  { %1366 = vmatpush3.bf16.msra.mxu0 %v1565_v5  ;;  %1294 = vmatprep.mubr.msk.f32.mxu0 %vm1534_vm0, %v1535_v4 }
   0xd   :  { %1367 = vmatprep.subr.bf16.mxu0 %v1533_v0 }
  0x10   :  { %1369 = vmatpush3.bf16.msra.mxu0 %v1574_v7 }
  0x11   :  { %1376 = vmatprep.subr.bf16.mxu0 %v1533_v0 }
  0xde   :  { %v87_v9 = vpop.f32.mrb[0].mxu0 }
  0xdf   :  { %v92_v10 = vrot.slane %v87_v9, 1  ;;  %v1274_v11 = vpop.f32.mrb[1].mxu0  ;;  %v95_v14 = vadd.f32 %v87_v9, %v1598_v12 }
  0xe1   :  { %v96_v13 = vadd.f32 %v92_v10, %v1593_v8  ;;  %v1201_v18 = vmul.f32 -1.442695, %v95_v14 }
  0xe3   :  { %1405 = vtanh.f32 %v96_v13  ;;  %v1202_v17 = vmul.f32 -1.442695, %v96_v13 }
  0xe4   :  { %1407 = vtanh.f32 %v95_v14 }
  0xe5   :  { %1409 = vpow2.f32 %v1202_v17 }
  0xe6   :  { %1411 = vpow2.f32 %v1201_v18 }
  0xed   :  { %v1406_v15 = vpop.eup %1405 }
  0xee   :  { %117 = vrot.lane.b32.xlu0 %v1406_v15, %s1536_s20  ;;  %v1408_v16 = vpop.eup %1407 }
  0xef   :  { %v1410_v19 = vpop.eup %1409 }
  0xf0   :  { %v104_v20 = vadd.f32 1.0, %v1410_v19  ;;  %v1412_v21 = vpop.eup %1411 }
  0xf1   :  { %v103_v22 = vadd.f32 1.0, %v1412_v21 }
  0xf2   :  { %115 = vrot.lane.b32.xlu0 %v1408_v16, %s1536_s20  ;;  %1413 = vrcp.f32 %v104_v20 }
  0xf3   :  { %1415 = vrcp.f32 %v103_v22 }
  0xfc   :  { %v1414_v23 = vpop.eup %1413 }
  0xfd   :  { %v1416_v26 = vpop.eup %1415  ;;  %v112_v29 = vmul.f32 0.0, %v1414_v23 }
  0xfe   :  { %v111_v32 = vmul.f32 0.0, %v1416_v26 }
 0x160   :  { %v118_v24 = vpop.permute.xlu0 %117 }
 0x161   :  { %v122_v25 = vmul.f32 %v1414_v23, %v118_v24 }
 0x163   :  { %127 = vrot.lane.b32.xlu1 %v122_v25, %s1537_s0 }
 0x164   :  { %v116_v27 = vpop.permute.xlu0 %115 }
 0x165   :  { %v121_v28 = vmul.f32 %v1416_v26, %v116_v27 }
 0x167   :  { %125 = vrot.lane.b32.xlu1 %v121_v28, %s1537_s0 }
 0x1d5   :  { %v128_v30 = vpop.permute.xlu1 %127 }
 0x1d6   :  { %v132_v31 = vadd.f32 %v128_v30, %v112_v29 }
 0x1d8   :  { %1417 = vtanh.f32 %v132_v31  ;;  %v256_v63 = vrot.slane %v132_v31, 7 }
 0x1d9   :  { %v126_v33 = vpop.permute.xlu1 %125 }
 0x1da   :  { %v131_v34 = vadd.f32 %v126_v33, %v111_v32 }
 0x1dc   :  { %1419 = vtanh.f32 %v131_v34  ;;  %v255_v2 = vrot.slane %v131_v34, 7 }
 0x1e2   :  { %v1418_v35 = vpop.eup %1417 }
 0x1e3   :  { %139 = vrot.lane.b32.xlu0 %v1418_v35, %s1536_s20 }
 0x1e6   :  { %v1420_v36 = vpop.eup %1419 }
 0x1e7   :  { %137 = vrot.lane.b32.xlu1 %v1420_v36, %s1536_s20 }
 0x255   :  { %v140_v37 = vpop.permute.xlu0 %139 }
 0x256   :  { %v1608_v38 = vmul.f32 %v1414_v23, %v140_v37 }
 0x258   :  { %v156_v40 = vrot.slane %v1608_v38, 7 }
 0x259   :  { %v138_v39 = vpop.permute.xlu1 %137 }
 0x25a   :  { %v1611_v41 = vmul.f32 %v1416_v26, %v138_v39 }
 0x25c   :  { %v158_v42 = vsel %vm157_vm1, %v156_v40, %v1611_v41 }
 0x25d   :  { %159 = vrot.lane.b32.xlu0 %v158_v42, %s1537_s0 }
 0x2cf   :  { %v160_v43 = vpop.permute.xlu0 %159 }
 0x2d0   :  { %1284 = vmatmul.mubr.msk.f32.vlgmr.msra.gmra.mrb[0].mxu1 %vm17_vm2, %v160_v43 }
 0x2d1   :  { %1372 = vmatpush3.bf16.msra.mxu1 %v1565_v5  ;;  %1305 = vmatprep.mubr.msk.f32.mxu1 %vm1534_vm0, %v1535_v4 }
 0x2d2   :  { %1373 = vmatprep.subr.bf16.mxu1 %v1533_v0 }
 0x2d5   :  { %1375 = vmatpush3.bf16.msra.mxu1 %v1574_v7 }
 0x2d6   :  { %1382 = vmatprep.subr.bf16.mxu1 %v1533_v0 }
 0x3a3   :  { %v229_v44 = vpop.f32.mrb[0].mxu1 }
 0x3a4   :  { %v234_v45 = vrot.slane %v229_v44, 7  ;;  %v238_v46 = vadd.f32 %v229_v44, %v1593_v8  ;;  %v1285_v47 = vpop.f32.mrb[1].mxu1 }
 0x3a6   :  { %v237_v48 = vadd.f32 %v234_v45, %v1598_v12  ;;  %1421 = vtanh.f32 %v238_v46  ;;  %v1205_v51 = vmul.f32 -1.442695, %v238_v46 }
 0x3a8   :  { %1423 = vtanh.f32 %v237_v48  ;;  %v1204_v52 = vmul.f32 -1.442695, %v237_v48 }
 0x3a9   :  { %1425 = vpow2.f32 %v1205_v51 }
 0x3aa   :  { %1427 = vpow2.f32 %v1204_v52 }
 0x3b0   :  { %v1422_v49 = vpop.eup %1421 }
 0x3b1   :  { %265 = vrot.lane.b32.xlu0 %v1422_v49, %s1536_s20 }
 0x3b2   :  { %v1424_v50 = vpop.eup %1423 }
 0x3b3   :  { %263 = vrot.lane.b32.xlu1 %v1424_v50, %s1536_s20  ;;  %v1426_v53 = vpop.eup %1425 }
 0x3b4   :  { %v1428_v54 = vpop.eup %1427  ;;  %v246_v55 = vadd.f32 1.0, %v1426_v53 }
 0x3b5   :  { %v245_v56 = vadd.f32 1.0, %v1428_v54 }
 0x3b6   :  { %1429 = vrcp.f32 %v246_v55 }
 0x3b7   :  { %1431 = vrcp.f32 %v245_v56 }
 0x3c0   :  { %v1430_v57 = vpop.eup %1429 }
 0x3c1   :  { %v1432_v60 = vpop.eup %1431  ;;  %v260_v1 = vmul.f32 %v1430_v57, %v256_v63 }
 0x3c2   :  { %v259_v9 = vmul.f32 %v1432_v60, %v255_v2 }
 0x423   :  { %v266_v58 = vpop.permute.xlu0 %265 }
 0x424   :  { %v270_v59 = vmul.f32 %v1430_v57, %v266_v58 }
 0x425   :  { %v264_v61 = vpop.permute.xlu1 %263 }
 0x426   :  { %275 = vrot.lane.b32.xlu0 %v270_v59, %s1537_s0  ;;  %v269_v62 = vmul.f32 %v1432_v60, %v264_v61 }
 0x428   :  { %273 = vrot.lane.b32.xlu1 %v269_v62, %s1537_s0 }
 0x498   :  { %v276_v3 = vpop.permute.xlu0 %275 }
 0x499   :  { %v280_v6 = vadd.f32 %v276_v3, %v260_v1 }
 0x49a   :  { %v274_v10 = vpop.permute.xlu1 %273 }
 0x49b   :  { %1433 = vtanh.f32 %v280_v6  ;;  %v279_v11 = vadd.f32 %v274_v10, %v259_v9  ;;  %v404_v45 = vrot.slane %v280_v6, 7 }
 0x49d   :  { %1435 = vtanh.f32 %v279_v11  ;;  %v403_v44 = vrot.slane %v279_v11, 7 }
 0x4a5   :  { %v1434_v13 = vpop.eup %1433 }
 0x4a6   :  { %287 = vrot.lane.b32.xlu0 %v1434_v13, %s1536_s20 }
 0x4a7   :  { %v1436_v14 = vpop.eup %1435 }
 0x4a8   :  { %285 = vrot.lane.b32.xlu1 %v1436_v14, %s1536_s20 }
 0x518   :  { %v288_v15 = vpop.permute.xlu0 %287 }
 0x519   :  { %v1633_v18 = vmul.f32 %v1430_v57, %v288_v15 }
 0x51a   :  { %v286_v16 = vpop.permute.xlu1 %285 }
 0x51b   :  { %v1631_v17 = vmul.f32 %v1432_v60, %v286_v16 }
 0x51d   :  { %v304_v19 = vrot.slane %v1631_v17, 1 }
 0x51f   :  { %v305_v20 = vsel %vm157_vm1, %v1633_v18, %v304_v19 }
 0x520   :  { %306 = vrot.lane.b32.xlu1 %v305_v20, %s1537_s0 }
 0x592   :  { %v307_v21 = vpop.permute.xlu1 %306 }
 0x593   :  { %1295 = vmatmul.mubr.msk.f32.vlgmr.msra.gmra.mrb[2].mxu0 %vm17_vm2, %v307_v21 }
 0x594   :  { %1378 = vmatpush3.bf16.msra.mxu0 %v1565_v5  ;;  %1316 = vmatprep.mubr.msk.f32.mxu0 %vm1534_vm0, %v1535_v4 }
 0x595   :  { %1379 = vmatprep.subr.bf16.mxu0 %v1533_v0 }
 0x598   :  { %1381 = vmatpush3.bf16.msra.mxu0 %v1574_v7 }
 0x599   :  { %1388 = vmatprep.subr.bf16.mxu0 %v1533_v0 }
 0x666   :  { %v376_v22 = vpop.f32.mrb[2].mxu0 }
 0x667   :  { %v381_v23 = vrot.slane %v376_v22, 6  ;;  %v382_v24 = vrot.slane %v376_v22, 7  ;;  %v1296_v25 = vpop.f32.mrb[3].mxu0 }
 0x669   :  { %v385_v26 = vadd.f32 %v381_v23, %v1598_v12  ;;  %v386_v27 = vadd.f32 %v382_v24, %v1593_v8 }
 0x66b   :  { %1437 = vtanh.f32 %v385_v26  ;;  %v1207_v30 = vmul.f32 -1.442695, %v385_v26  ;;  %v1208_v31 = vmul.f32 -1.442695, %v386_v27 }
 0x66c   :  { %1439 = vtanh.f32 %v386_v27 }
 0x66d   :  { %1441 = vpow2.f32 %v1207_v30 }
 0x66e   :  { %1443 = vpow2.f32 %v1208_v31 }
 0x675   :  { %v1438_v28 = vpop.eup %1437 }
 0x676   :  { %v1440_v29 = vpop.eup %1439  ;;  %411 = vrot.lane.b32.xlu0 %v1438_v28, %s1536_s20 }
 0x677   :  { %413 = vrot.lane.b32.xlu1 %v1440_v29, %s1536_s20  ;;  %v1442_v32 = vpop.eup %1441 }
 0x678   :  { %v1444_v33 = vpop.eup %1443  ;;  %v393_v34 = vadd.f32 1.0, %v1442_v32 }
 0x679   :  { %v394_v35 = vadd.f32 1.0, %v1444_v33 }
 0x67a   :  { %1445 = vrcp.f32 %v393_v34 }
 0x67b   :  { %1447 = vrcp.f32 %v394_v35 }
 0x684   :  { %v1446_v36 = vpop.eup %1445 }
 0x685   :  { %v1448_v39 = vpop.eup %1447  ;;  %v407_v46 = vmul.f32 %v1446_v36, %v403_v44 }
 0x686   :  { %v408_v47 = vmul.f32 %v1448_v39, %v404_v45 }
 0x6e8   :  { %v412_v37 = vpop.permute.xlu0 %411 }
 0x6e9   :  { %v414_v40 = vpop.permute.xlu1 %413  ;;  %v417_v42 = vmul.f32 %v1446_v36, %v412_v37 }
 0x6ea   :  { %v418_v43 = vmul.f32 %v1448_v39, %v414_v40 }
 0x6eb   :  { %421 = vrot.lane.b32.xlu0 %v417_v42, %s1537_s0 }
 0x6ec   :  { %423 = vrot.lane.b32.xlu1 %v418_v43, %s1537_s0 }
 0x75d   :  { %v422_v48 = vpop.permute.xlu0 %421 }
 0x75e   :  { %v424_v49 = vpop.permute.xlu1 %423  ;;  %v427_v50 = vadd.f32 %v422_v48, %v407_v46 }
 0x75f   :  { %v428_v51 = vadd.f32 %v424_v49, %v408_v47 }
 0x760   :  { %1449 = vtanh.f32 %v427_v50  ;;  %v552_v26 = vrot.slane %v427_v50, 7 }
 0x761   :  { %1451 = vtanh.f32 %v428_v51  ;;  %v553_v27 = vrot.slane %v428_v51, 7 }
 0x76a   :  { %v1450_v52 = vpop.eup %1449 }
 0x76b   :  { %v1452_v53 = vpop.eup %1451  ;;  %433 = vrot.lane.b32.xlu0 %v1450_v52, %s1536_s20 }
 0x76c   :  { %435 = vrot.lane.b32.xlu1 %v1452_v53, %s1536_s20 }
 0x7dd   :  { %v434_v54 = vpop.permute.xlu0 %433 }
 0x7de   :  { %v436_v55 = vpop.permute.xlu1 %435  ;;  %v1654_v56 = vmul.f32 %v1446_v36, %v434_v54 }
 0x7df   :  { %v1656_v57 = vmul.f32 %v1448_v39, %v436_v55 }
 0x7e0   :  { %v452_v58 = vrot.slane %v1654_v56, 2 }
 0x7e1   :  { %v453_v59 = vrot.slane %v1656_v57, 1 }
 0x7e3   :  { %v454_v60 = vsel %vm157_vm1, %v453_v59, %v452_v58 }
 0x7e4   :  { %455 = vrot.lane.b32.xlu0 %v454_v60, %s1537_s0 }
 0x856   :  { %v456_v61 = vpop.permute.xlu0 %455 }
 0x857   :  { %1306 = vmatmul.mubr.msk.f32.vlgmr.msra.gmra.mrb[2].mxu1 %vm17_vm2, %v456_v61 }
 0x858   :  { %1384 = vmatpush3.bf16.msra.mxu1 %v1565_v5  ;;  %1327 = vmatprep.mubr.msk.f32.mxu1 %vm1534_vm0, %v1535_v4 }
 0x859   :  { %1385 = vmatprep.subr.bf16.mxu1 %v1533_v0 }
 0x85c   :  { %1387 = vmatpush3.bf16.msra.mxu1 %v1574_v7 }
 0x85d   :  { %1394 = vmatprep.subr.bf16.mxu1 %v1533_v0 }
 0x92a   :  { %v525_v62 = vpop.f32.mrb[2].mxu1 }
 0x92b   :  { %v530_v63 = vrot.slane %v525_v62, 5  ;;  %v531_v1 = vrot.slane %v525_v62, 6  ;;  %v1307_v2 = vpop.f32.mrb[3].mxu1 }
 0x92d   :  { %v534_v3 = vadd.f32 %v530_v63, %v1598_v12  ;;  %v535_v6 = vadd.f32 %v531_v1, %v1593_v8 }
 0x92f   :  { %1453 = vtanh.f32 %v534_v3  ;;  %v1210_v11 = vmul.f32 -1.442695, %v534_v3  ;;  %v1211_v13 = vmul.f32 -1.442695, %v535_v6 }
 0x930   :  { %1455 = vtanh.f32 %v535_v6 }
 0x931   :  { %1457 = vpow2.f32 %v1210_v11 }
 0x932   :  { %1459 = vpow2.f32 %v1211_v13 }
 0x939   :  { %v1454_v9 = vpop.eup %1453 }
 0x93a   :  { %v1456_v10 = vpop.eup %1455  ;;  %560 = vrot.lane.b32.xlu1 %v1454_v9, %s1536_s20 }
 0x93b   :  { %562 = vrot.lane.b32.xlu0 %v1456_v10, %s1536_s20  ;;  %v1458_v14 = vpop.eup %1457 }
 0x93c   :  { %v1460_v15 = vpop.eup %1459  ;;  %v542_v16 = vadd.f32 1.0, %v1458_v14 }
 0x93d   :  { %v543_v19 = vadd.f32 1.0, %v1460_v15 }
 0x93e   :  { %1461 = vrcp.f32 %v542_v16 }
 0x93f   :  { %1463 = vrcp.f32 %v543_v19 }
 0x948   :  { %v1462_v20 = vpop.eup %1461 }
 0x949   :  { %v1464_v22 = vpop.eup %1463  ;;  %v556_v28 = vmul.f32 %v1462_v20, %v552_v26 }
 0x94a   :  { %v557_v29 = vmul.f32 %v1464_v22, %v553_v27 }
 0x9ac   :  { %v561_v21 = vpop.permute.xlu1 %560 }
 0x9ad   :  { %v563_v23 = vpop.permute.xlu0 %562  ;;  %v566_v24 = vmul.f32 %v1462_v20, %v561_v21 }
 0x9ae   :  { %v567_v25 = vmul.f32 %v1464_v22, %v563_v23 }
 0x9af   :  { %570 = vrot.lane.b32.xlu1 %v566_v24, %s1537_s0 }
 0x9b0   :  { %572 = vrot.lane.b32.xlu0 %v567_v25, %s1537_s0 }
 0xa21   :  { %v571_v30 = vpop.permute.xlu1 %570 }
 0xa22   :  { %v573_v31 = vpop.permute.xlu0 %572  ;;  %v576_v32 = vadd.f32 %v571_v30, %v556_v28 }
 0xa23   :  { %v577_v33 = vadd.f32 %v573_v31, %v557_v29 }
 0xa24   :  { %1465 = vtanh.f32 %v576_v32  ;;  %v701_v9 = vrot.slane %v576_v32, 7 }
 0xa25   :  { %1467 = vtanh.f32 %v577_v33  ;;  %v702_v10 = vrot.slane %v577_v33, 7 }
 0xa2e   :  { %v1466_v34 = vpop.eup %1465 }
 0xa2f   :  { %v1468_v35 = vpop.eup %1467  ;;  %582 = vrot.lane.b32.xlu1 %v1466_v34, %s1536_s20 }
 0xa30   :  { %584 = vrot.lane.b32.xlu0 %v1468_v35, %s1536_s20 }
 0xaa1   :  { %v583_v36 = vpop.permute.xlu1 %582 }
 0xaa2   :  { %v585_v37 = vpop.permute.xlu0 %584  ;;  %v1677_v39 = vmul.f32 %v1462_v20, %v583_v36 }
 0xaa3   :  { %v1679_v40 = vmul.f32 %v1464_v22, %v585_v37 }
 0xaa4   :  { %v601_v42 = vrot.slane %v1677_v39, 3 }
 0xaa5   :  { %v602_v43 = vrot.slane %v1679_v40, 2 }
 0xaa7   :  { %v603_v44 = vsel %vm157_vm1, %v602_v43, %v601_v42 }
 0xaa8   :  { %604 = vrot.lane.b32.xlu1 %v603_v44, %s1537_s0 }
 0xb1a   :  { %v605_v45 = vpop.permute.xlu1 %604 }
 0xb1b   :  { %1317 = vmatmul.mubr.msk.f32.vlgmr.msra.gmra.mrb[4].mxu0 %vm17_vm2, %v605_v45 }
 0xb1c   :  { %1390 = vmatpush3.bf16.msra.mxu0 %v1565_v5  ;;  %1338 = vmatprep.mubr.msk.f32.mxu0 %vm1534_vm0, %v1535_v4 }
 0xb1d   :  { %1391 = vmatprep.subr.bf16.mxu0 %v1533_v0 }
 0xb20   :  { %1393 = vmatpush3.bf16.msra.mxu0 %v1574_v7 }
 0xbee   :  { %v674_v46 = vpop.f32.mrb[4].mxu0 }
 0xbef   :  { %v679_v47 = vrot.slane %v674_v46, 4  ;;  %v680_v48 = vrot.slane %v674_v46, 5  ;;  %v1318_v49 = vpop.f32.mrb[5].mxu0 }
 0xbf1   :  { %v683_v50 = vadd.f32 %v679_v47, %v1598_v12  ;;  %v684_v51 = vadd.f32 %v680_v48, %v1593_v8 }
 0xbf3   :  { %1469 = vtanh.f32 %v683_v50  ;;  %v1213_v54 = vmul.f32 -1.442695, %v683_v50  ;;  %v1214_v55 = vmul.f32 -1.442695, %v684_v51 }
 0xbf4   :  { %1471 = vtanh.f32 %v684_v51 }
 0xbf5   :  { %1473 = vpow2.f32 %v1213_v54 }
 0xbf6   :  { %1475 = vpow2.f32 %v1214_v55 }
 0xbfd   :  { %v1470_v52 = vpop.eup %1469 }
 0xbfe   :  { %v1472_v53 = vpop.eup %1471  ;;  %709 = vrot.lane.b32.xlu0 %v1470_v52, %s1536_s20 }
 0xbff   :  { %711 = vrot.lane.b32.xlu1 %v1472_v53, %s1536_s20  ;;  %v1474_v58 = vpop.eup %1473 }
 0xc00   :  { %v1476_v59 = vpop.eup %1475  ;;  %v691_v60 = vadd.f32 1.0, %v1474_v58 }
 0xc01   :  { %v692_v61 = vadd.f32 1.0, %v1476_v59 }
 0xc02   :  { %1477 = vrcp.f32 %v691_v60 }
 0xc03   :  { %1479 = vrcp.f32 %v692_v61 }
 0xc0c   :  { %v1478_v62 = vpop.eup %1477 }
 0xc0d   :  { %v1480_v1 = vpop.eup %1479  ;;  %v705_v11 = vmul.f32 %v1478_v62, %v701_v9 }
 0xc0e   :  { %v706_v13 = vmul.f32 %v1480_v1, %v702_v10 }
 0xc70   :  { %v710_v63 = vpop.permute.xlu0 %709 }
 0xc71   :  { %v712_v2 = vpop.permute.xlu1 %711  ;;  %v715_v3 = vmul.f32 %v1478_v62, %v710_v63 }
 0xc72   :  { %v716_v6 = vmul.f32 %v1480_v1, %v712_v2 }
 0xc73   :  { %719 = vrot.lane.b32.xlu0 %v715_v3, %s1537_s0 }
 0xc74   :  { %721 = vrot.lane.b32.xlu1 %v716_v6, %s1537_s0 }
 0xce5   :  { %v720_v14 = vpop.permute.xlu0 %719 }
 0xce6   :  { %v722_v15 = vpop.permute.xlu1 %721  ;;  %v725_v16 = vadd.f32 %v720_v14, %v705_v11 }
 0xce7   :  { %v726_v19 = vadd.f32 %v722_v15, %v706_v13 }
 0xce8   :  { %1481 = vtanh.f32 %v725_v16  ;;  %v850_v50 = vrot.slane %v725_v16, 7 }
 0xce9   :  { %1483 = vtanh.f32 %v726_v19  ;;  %v851_v51 = vrot.slane %v726_v19, 7 }
 0xcf2   :  { %v1482_v20 = vpop.eup %1481 }
 0xcf3   :  { %v1484_v21 = vpop.eup %1483  ;;  %731 = vrot.lane.b32.xlu0 %v1482_v20, %s1536_s20 }
 0xcf4   :  { %733 = vrot.lane.b32.xlu1 %v1484_v21, %s1536_s20 }
 0xd65   :  { %v732_v22 = vpop.permute.xlu0 %731 }
 0xd66   :  { %v734_v23 = vpop.permute.xlu1 %733  ;;  %v1699_v24 = vmul.f32 %v1478_v62, %v732_v22 }
 0xd67   :  { %v1701_v25 = vmul.f32 %v1480_v1, %v734_v23 }
 0xd68   :  { %v750_v26 = vrot.slane %v1699_v24, 4 }
 0xd69   :  { %v751_v27 = vrot.slane %v1701_v25, 3 }
 0xd6b   :  { %v752_v28 = vsel %vm157_vm1, %v751_v27, %v750_v26 }
 0xd6c   :  { %753 = vrot.lane.b32.xlu0 %v752_v28, %s1537_s0 }
 0xdde   :  { %v754_v29 = vpop.permute.xlu0 %753 }
 0xddf   :  { %1328 = vmatmul.mubr.msk.f32.vlgmr.msra.gmra.mrb[4].mxu1 %vm17_vm2, %v754_v29 }
 0xde0   :  { %1396 = vmatpush3.bf16.msra.mxu1 %v1565_v5  ;;  %1349 = vmatprep.mubr.msk.f32.mxu1 %vm1534_vm0, %v1535_v4 }
 0xde1   :  { %1397 = vmatprep.subr.bf16.mxu1 %v1533_v0 }
 0xde4   :  { %1399 = vmatpush3.bf16.msra.mxu1 %v1574_v7 }
 0xeb2   :  { %v823_v30 = vpop.f32.mrb[4].mxu1 }
 0xeb3   :  { %v828_v31 = vrot.slane %v823_v30, 3  ;;  %v829_v32 = vrot.slane %v823_v30, 4  ;;  %v1329_v33 = vpop.f32.mrb[5].mxu1 }
 0xeb5   :  { %v832_v34 = vadd.f32 %v828_v31, %v1598_v12  ;;  %v833_v35 = vadd.f32 %v829_v32, %v1593_v8 }
 0xeb7   :  { %1485 = vtanh.f32 %v832_v34  ;;  %v1216_v4 = vmul.f32 -1.442695, %v832_v34  ;;  %v1217_v0 = vmul.f32 -1.442695, %v833_v35 }
 0xeb8   :  { %1487 = vtanh.f32 %v833_v35 }
 0xeb9   :  { %1489 = vpow2.f32 %v1216_v4 }
 0xeba   :  { %1491 = vpow2.f32 %v1217_v0 }
 0xec1   :  { %v1486_v36 = vpop.eup %1485 }
 0xec2   :  { %v1488_v37 = vpop.eup %1487  ;;  %858 = vrot.lane.b32.xlu1 %v1486_v36, %s1536_s20 }
 0xec3   :  { %860 = vrot.lane.b32.xlu0 %v1488_v37, %s1536_s20  ;;  %v1490_v5 = vpop.eup %1489 }
 0xec4   :  { %v1492_v7 = vpop.eup %1491  ;;  %v840_v42 = vadd.f32 1.0, %v1490_v5 }
 0xec5   :  { %v841_v43 = vadd.f32 1.0, %v1492_v7 }
 0xec6   :  { %1493 = vrcp.f32 %v840_v42 }
 0xec7   :  { %1495 = vrcp.f32 %v841_v43 }
 0xed0   :  { %v1494_v44 = vpop.eup %1493 }
 0xed1   :  { %v1496_v46 = vpop.eup %1495  ;;  %v854_v52 = vmul.f32 %v1494_v44, %v850_v50 }
 0xed2   :  { %v855_v53 = vmul.f32 %v1496_v46, %v851_v51 }
 0xf34   :  { %v859_v45 = vpop.permute.xlu1 %858 }
 0xf35   :  { %v861_v47 = vpop.permute.xlu0 %860  ;;  %v864_v48 = vmul.f32 %v1494_v44, %v859_v45 }
 0xf36   :  { %v865_v49 = vmul.f32 %v1496_v46, %v861_v47 }
 0xf37   :  { %868 = vrot.lane.b32.xlu1 %v864_v48, %s1537_s0 }
 0xf38   :  { %870 = vrot.lane.b32.xlu0 %v865_v49, %s1537_s0 }
 0xfa9   :  { %v869_v54 = vpop.permute.xlu1 %868 }
 0xfaa   :  { %v871_v55 = vpop.permute.xlu0 %870  ;;  %v874_v58 = vadd.f32 %v869_v54, %v854_v52 }
 0xfab   :  { %v875_v59 = vadd.f32 %v871_v55, %v855_v53 }
 0xfac   :  { %1497 = vtanh.f32 %v874_v58  ;;  %v999_v36 = vrot.slane %v874_v58, 7 }
 0xfad   :  { %1499 = vtanh.f32 %v875_v59  ;;  %v1000_v37 = vrot.slane %v875_v59, 7 }
 0xfb6   :  { %v1498_v60 = vpop.eup %1497 }
 0xfb7   :  { %v1500_v61 = vpop.eup %1499  ;;  %880 = vrot.lane.b32.xlu1 %v1498_v60, %s1536_s20 }
 0xfb8   :  { %882 = vrot.lane.b32.xlu0 %v1500_v61, %s1536_s20 }
0x1029   :  { %v881_v62 = vpop.permute.xlu1 %880 }
0x102a   :  { %v883_v63 = vpop.permute.xlu0 %882  ;;  %v1721_v1 = vmul.f32 %v1494_v44, %v881_v62 }
0x102b   :  { %v1723_v2 = vmul.f32 %v1496_v46, %v883_v63 }
0x102c   :  { %v899_v3 = vrot.slane %v1721_v1, 5 }
0x102d   :  { %v900_v6 = vrot.slane %v1723_v2, 4 }
0x102f   :  { %v901_v9 = vsel %vm157_vm1, %v900_v6, %v899_v3 }
0x1030   :  { %902 = vrot.lane.b32.xlu1 %v901_v9, %s1537_s0 }
0x10a2   :  { %v903_v10 = vpop.permute.xlu1 %902 }
0x10a3   :  { %1339 = vmatmul.mubr.msk.f32.vlgmr.msra.gmra.mrb[6].mxu0 %vm17_vm2, %v903_v10 }
0x1176   :  { %v972_v11 = vpop.f32.mrb[6].mxu0 }
0x1177   :  { %v977_v13 = vrot.slane %v972_v11, 2  ;;  %v978_v14 = vrot.slane %v972_v11, 3  ;;  %v1340_v15 = vpop.f32.mrb[7].mxu0 }
0x1179   :  { %v981_v16 = vadd.f32 %v977_v13, %v1598_v12  ;;  %v982_v19 = vadd.f32 %v978_v14, %v1593_v8 }
0x117b   :  { %1501 = vtanh.f32 %v981_v16  ;;  %v1219_v22 = vmul.f32 -1.442695, %v981_v16  ;;  %v1220_v23 = vmul.f32 -1.442695, %v982_v19 }
0x117c   :  { %1503 = vtanh.f32 %v982_v19 }
0x117d   :  { %1505 = vpow2.f32 %v1219_v22 }
0x117e   :  { %1507 = vpow2.f32 %v1220_v23 }
0x1185   :  { %v1502_v20 = vpop.eup %1501 }
0x1186   :  { %v1504_v21 = vpop.eup %1503  ;;  %1007 = vrot.lane.b32.xlu0 %v1502_v20, %s1536_s20 }
0x1187   :  { %1009 = vrot.lane.b32.xlu1 %v1504_v21, %s1536_s20  ;;  %v1506_v26 = vpop.eup %1505 }
0x1188   :  { %v1508_v27 = vpop.eup %1507  ;;  %v989_v28 = vadd.f32 1.0, %v1506_v26 }
0x1189   :  { %v990_v29 = vadd.f32 1.0, %v1508_v27 }
0x118a   :  { %1509 = vrcp.f32 %v989_v28 }
0x118b   :  { %1511 = vrcp.f32 %v990_v29 }
0x1194   :  { %v1510_v30 = vpop.eup %1509 }
0x1195   :  { %v1512_v32 = vpop.eup %1511  ;;  %v1003_v4 = vmul.f32 %v1510_v30, %v999_v36 }
0x1196   :  { %v1004_v0 = vmul.f32 %v1512_v32, %v1000_v37 }
0x11f8   :  { %v1008_v31 = vpop.permute.xlu0 %1007 }
0x11f9   :  { %v1010_v33 = vpop.permute.xlu1 %1009  ;;  %v1013_v34 = vmul.f32 %v1510_v30, %v1008_v31 }
0x11fa   :  { %v1014_v35 = vmul.f32 %v1512_v32, %v1010_v33 }
0x11fb   :  { %1017 = vrot.lane.b32.xlu0 %v1013_v34, %s1537_s0 }
0x11fc   :  { %1019 = vrot.lane.b32.xlu1 %v1014_v35, %s1537_s0 }
0x126d   :  { %v1018_v5 = vpop.permute.xlu0 %1017 }
0x126e   :  { %v1020_v7 = vpop.permute.xlu1 %1019  ;;  %v1023_v42 = vadd.f32 %v1018_v5, %v1003_v4 }
0x126f   :  { %v1024_v43 = vadd.f32 %v1020_v7, %v1004_v0 }
0x1270   :  { %1513 = vtanh.f32 %v1023_v42  ;;  %v1148_v20 = vrot.slane %v1023_v42, 7 }
0x1271   :  { %1515 = vtanh.f32 %v1024_v43  ;;  %v1149_v21 = vrot.slane %v1024_v43, 7 }
0x127a   :  { %v1514_v44 = vpop.eup %1513 }
0x127b   :  { %v1516_v45 = vpop.eup %1515  ;;  %1029 = vrot.lane.b32.xlu0 %v1514_v44, %s1536_s20 }
0x127c   :  { %1031 = vrot.lane.b32.xlu1 %v1516_v45, %s1536_s20 }
0x12ed   :  { %v1030_v46 = vpop.permute.xlu0 %1029 }
0x12ee   :  { %v1032_v47 = vpop.permute.xlu1 %1031  ;;  %v1738_v48 = vmul.f32 %v1510_v30, %v1030_v46 }
0x12ef   :  { %v1740_v49 = vmul.f32 %v1512_v32, %v1032_v47 }
0x12f0   :  { %v1048_v50 = vrot.slane %v1738_v48, 6 }
0x12f1   :  { %v1049_v51 = vrot.slane %v1740_v49, 5 }
0x12f3   :  { %v1050_v52 = vsel %vm157_vm1, %v1049_v51, %v1048_v50 }
0x12f4   :  { %1051 = vrot.lane.b32.xlu0 %v1050_v52, %s1537_s0 }
0x1366   :  { %v1052_v53 = vpop.permute.xlu0 %1051 }
0x1367   :  { %1350 = vmatmul.mubr.msk.f32.vlgmr.msra.gmra.mrb[6].mxu1 %vm17_vm2, %v1052_v53 }
0x143a   :  { %v1121_v54 = vpop.f32.mrb[6].mxu1 }
0x143b   :  { %v1126_v55 = vrot.slane %v1121_v54, 1  ;;  %v1127_v58 = vrot.slane %v1121_v54, 2  ;;  %v1351_v59 = vpop.f32.mrb[7].mxu1 }
0x143d   :  { %v1130_v60 = vadd.f32 %v1126_v55, %v1598_v12  ;;  %v1131_v61 = vadd.f32 %v1127_v58, %v1593_v8 }
0x143f   :  { %1517 = vtanh.f32 %v1130_v60  ;;  %v1222_v3 = vmul.f32 -1.442695, %v1130_v60  ;;  %v1223_v6 = vmul.f32 -1.442695, %v1131_v61 }
0x1440   :  { %1519 = vtanh.f32 %v1131_v61 }
0x1441   :  { %1521 = vpow2.f32 %v1222_v3 }
0x1442   :  { %1523 = vpow2.f32 %v1223_v6 }
0x1449   :  { %v1518_v62 = vpop.eup %1517 }
0x144a   :  { %v1520_v63 = vpop.eup %1519  ;;  %1156 = vrot.lane.b32.xlu1 %v1518_v62, %s1536_s20 }
0x144b   :  { %1158 = vrot.lane.b32.xlu0 %v1520_v63, %s1536_s20  ;;  %v1522_v9 = vpop.eup %1521 }
0x144c   :  { %v1524_v10 = vpop.eup %1523  ;;  %v1138_v11 = vadd.f32 1.0, %v1522_v9 }
0x144d   :  { %v1139_v13 = vadd.f32 1.0, %v1524_v10 }
0x144e   :  { %1525 = vrcp.f32 %v1138_v11 }
0x144f   :  { %1527 = vrcp.f32 %v1139_v13 }
0x1458   :  { %v1526_v12 = vpop.eup %1525 }
0x1459   :  { %v1528_v14 = vpop.eup %1527  ;;  %v1152_v22 = vmul.f32 %v1526_v12, %v1148_v20 }
0x145a   :  { %v1153_v23 = vmul.f32 %v1528_v14, %v1149_v21 }
0x14bc   :  { %v1157_v8 = vpop.permute.xlu1 %1156 }
0x14bd   :  { %v1159_v15 = vpop.permute.xlu0 %1158  ;;  %v1162_v16 = vmul.f32 %v1526_v12, %v1157_v8 }
0x14be   :  { %v1163_v19 = vmul.f32 %v1528_v14, %v1159_v15 }
0x14bf   :  { %1166 = vrot.lane.b32.xlu1 %v1162_v16, %s1537_s0 }
0x14c0   :  { %1168 = vrot.lane.b32.xlu0 %v1163_v19, %s1537_s0 }
0x1531   :  { %v1167_v26 = vpop.permute.xlu1 %1166 }
0x1532   :  { %v1169_v27 = vpop.permute.xlu0 %1168  ;;  %v1172_v28 = vadd.f32 %v1167_v26, %v1152_v22 }
0x1533   :  { %v1173_v29 = vadd.f32 %v1169_v27, %v1153_v23 }
0x1534   :  { %1529 = vtanh.f32 %v1172_v28 }
0x1535   :  { %1531 = vtanh.f32 %v1173_v29 }
0x153e   :  { %v1530_v30 = vpop.eup %1529 }
0x153f   :  { %v1532_v31 = vpop.eup %1531  ;;  %1178 = vrot.lane.b32.xlu1 %v1530_v30, %s1536_s20 }
0x1540   :  { %1180 = vrot.lane.b32.xlu0 %v1532_v31, %s1536_s20 }
0x1543   :  { %147 = vrot.lane.b32.xlu1 %v1611_v41, %s1537_s0 }
0x1544   :  { %149 = vrot.lane.b32.xlu0 %v1608_v38, %s1537_s0 }
0x1547   :  { %295 = vrot.lane.b32.xlu1 %v1631_v17, %s1537_s0 }
0x1548   :  { %297 = vrot.lane.b32.xlu0 %v1633_v18, %s1537_s0 }
0x154b   :  { %443 = vrot.lane.b32.xlu1 %v1654_v56, %s1537_s0 }
0x154c   :  { %445 = vrot.lane.b32.xlu0 %v1656_v57, %s1537_s0 }
0x154f   :  { %592 = vrot.lane.b32.xlu1 %v1677_v39, %s1537_s0 }
0x1550   :  { %594 = vrot.lane.b32.xlu0 %v1679_v40, %s1537_s0 }
0x1553   :  { %741 = vrot.lane.b32.xlu1 %v1699_v24, %s1537_s0 }
0x1554   :  { %743 = vrot.lane.b32.xlu0 %v1701_v25, %s1537_s0 }
0x1557   :  { %890 = vrot.lane.b32.xlu1 %v1721_v1, %s1537_s0 }
0x1558   :  { %892 = vrot.lane.b32.xlu0 %v1723_v2, %s1537_s0 }
0x155b   :  { %1039 = vrot.lane.b32.xlu1 %v1738_v48, %s1537_s0 }
0x155c   :  { %1041 = vrot.lane.b32.xlu0 %v1740_v49, %s1537_s0 }
0x15b1   :  { %v1179_v38 = vpop.permute.xlu1 %1178 }
0x15b2   :  { %v1181_v41 = vpop.permute.xlu0 %1180  ;;  %v1184_v17 = vmul.f32 %v1526_v12, %v1179_v38 }
0x15b3   :  { %v1185_v18 = vmul.f32 %v1528_v14, %v1181_v41 }
0x15b4   :  { %1188 = vrot.lane.b32.xlu1 %v1184_v17, %s1537_s0 }
0x15b5   :  { %1190 = vrot.lane.b32.xlu0 %v1185_v18, %s1537_s0  ;;  %v148_v56 = vpop.permute.xlu1 %147 }
0x15b6   :  { %v150_v57 = vpop.permute.xlu0 %149  ;;  %154 = vst.msk [vmem:[%s1835_s2] sm:$0x1] %vm153_vm3, %v148_v56 }
0x15b7   :  { %155 = vst.msk [vmem:[%s1835_s2 + $0x8] sm:$0x1] %vm153_vm3, %v150_v57 }
0x15b9   :  { %v296_v39 = vpop.permute.xlu1 %295 }
0x15ba   :  { %v298_v40 = vpop.permute.xlu0 %297  ;;  %302 = vst.msk [vmem:[%s1835_s2] sm:$0x2] %vm301_vm4, %v296_v39 }
0x15bb   :  { %303 = vst.msk [vmem:[%s1835_s2 + $0x8] sm:$0x2] %vm301_vm4, %v298_v40 }
0x15bd   :  { %v444_v24 = vpop.permute.xlu1 %443 }
0x15be   :  { %v446_v25 = vpop.permute.xlu0 %445  ;;  %450 = vst.msk [vmem:[%s1835_s2] sm:$0x4] %vm449_vm5, %v444_v24 }
0x15bf   :  { %451 = vst.msk [vmem:[%s1835_s2 + $0x8] sm:$0x4] %vm449_vm5, %v446_v25 }
0x15c1   :  { %v593_v1 = vpop.permute.xlu1 %592 }
0x15c2   :  { %v595_v2 = vpop.permute.xlu0 %594  ;;  %599 = vst.msk [vmem:[%s1835_s2] sm:$0x8] %vm598_vm6, %v593_v1 }
0x15c3   :  { %600 = vst.msk [vmem:[%s1835_s2 + $0x8] sm:$0x8] %vm598_vm6, %v595_v2 }
0x15c5   :  { %v742_v32 = vpop.permute.xlu1 %741 }
0x15c6   :  { %v744_v33 = vpop.permute.xlu0 %743  ;;  %748 = vst.msk [vmem:[%s1835_s2] sm:$0x10] %vm747_vm7, %v742_v32 }
0x15c7   :  { %749 = vst.msk [vmem:[%s1835_s2 + $0x8] sm:$0x10] %vm747_vm7, %v744_v33 }
0x15c9   :  { %v891_v34 = vpop.permute.xlu1 %890 }
0x15ca   :  { %v893_v35 = vpop.permute.xlu0 %892  ;;  %897 = vst.msk [vmem:[%s1835_s2] sm:$0x20] %vm896_vm8, %v891_v34 }
0x15cb   :  { %898 = vst.msk [vmem:[%s1835_s2 + $0x8] sm:$0x20] %vm896_vm8, %v893_v35 }
0x15cd   :  { %v1040_v36 = vpop.permute.xlu1 %1039 }
0x15ce   :  { %v1042_v37 = vpop.permute.xlu0 %1041  ;;  %1046 = vst.msk [vmem:[%s1835_s2] sm:$0x40] %vm1045_vm9, %v1040_v36 }
0x15cf   :  { %1047 = vst.msk [vmem:[%s1835_s2 + $0x8] sm:$0x40] %vm1045_vm9, %v1042_v37 }
0x1626   :  { %v1189_v4 = vpop.permute.xlu1 %1188 }
0x1627   :  { %v1191_v0 = vpop.permute.xlu0 %1190  ;;  %1195 = vst.msk [vmem:[%s1835_s2] sm:$0x80] %vm1194_vm10, %v1189_v4 }
0x1628   :  { %1196 = vst.msk [vmem:[%s1835_s2 + $0x8] sm:$0x80] %vm1194_vm10, %v1191_v0 }

</bundles_post_ra>
